<compile_context>
chip_gen: v5e
topology: v5e:2x2
jax: 0.10.0
libtpu: 0.0.40
codegen_flags: <defaults>
</compile_context>

<pallas_src>
import functools

import numpy as np

import jax
import jax.numpy as jnp
from jax.experimental import pallas as pl
from jax.experimental.pallas import tpu as pltpu


# ----------------------------------------------------------------------------
# Fused kernel: conv3x3(+BN)+ReLU6  ->  1x1 projection  ->  bilinear resize
# ----------------------------------------------------------------------------
def _auxhead_kernel(xcol_ref, wconv_ref, shift_ref, woutT_ref, ry_ref, rxT_ref,
                    o_ref, *, H, W, C, NC, out_h, out_w):
    # --- 3x3 conv as a single im2col MXU matmul (K = 9C), BN scale pre-folded ---
    acc = jnp.dot(xcol_ref[0], wconv_ref[...],
                  preferred_element_type=jnp.float32)              # (H*W, C) f32

    # folded BatchNorm shift + ReLU6.
    # TODO(synk): Dropout(0.1) is the identity at inference; train-mode masking and
    #             BatchNorm batch statistics are not reproduced.
    feat = jnp.clip(acc + shift_ref[...], 0.0, 6.0)

    # Tile-aligned leading-dim split (W % 8 == 0): no lane relayout.
    feat3 = feat.reshape(H, W, C).astype(jnp.bfloat16)             # (H, W, C)

    # --- 1x1 conv_out, batched over image rows -> (H, NC, W) ---
    # classes land on sublanes, image columns on lanes, so the resize below is
    # expressible with plain 2D matmuls (no kron, no lane-merging reshape).
    woutT_b = jnp.broadcast_to(woutT_ref[...][None], (H, NC, C))   # bf16
    logits = jnp.einsum('hnc,hwc->hnw', woutT_b, feat3,
                        preferred_element_type=jnp.float32)        # (H, NC, W) f32

    # --- separable bilinear resize (align_corners=False), one class at a time ---
    #     out_c = Ry @ logits_c @ Rx^T   (small 2D MXU matmuls, bf16 in / f32 acc)
    # results are written straight into the NCHW output block.
    ry = ry_ref[...]                                               # (out_h, H) bf16
    rxT = rxT_ref[...]                                             # (W, out_w) bf16
    for c in range(NC):                                            # NC = 8, unrolled
        lc = logits[:, c, :].astype(jnp.bfloat16)                  # (H, W)
        tmp = jnp.dot(ry, lc, preferred_element_type=jnp.float32)  # (out_h, W)
        o_ref[0, c] = jnp.dot(tmp.astype(jnp.bfloat16), rxT,
                              preferred_element_type=jnp.float32)  # (out_h, out_w)


# ----------------------------------------------------------------------------
# Host-side helpers
# ----------------------------------------------------------------------------
def _bilinear_matrix(out_size, in_size):
    """Row weights matching F.interpolate(mode='bilinear', align_corners=False)."""
    d = np.arange(out_size, dtype=np.float64)
    src = (d + 0.5) * (float(in_size) / float(out_size)) - 0.5
    src = np.maximum(src, 0.0)
    i0 = np.minimum(np.floor(src).astype(np.int64), in_size - 1)
    frac = src - i0
    i1 = np.minimum(i0 + 1, in_size - 1)
    m = np.zeros((out_size, in_size), np.float32)
    rows = np.arange(out_size)
    np.add.at(m, (rows, i0), (1.0 - frac).astype(np.float32))
    np.add.at(m, (rows, i1), frac.astype(np.float32))
    return m


def _im2col_3x3(x_nhwc):
    """(B,H,W,C) -> (B, H*W, 9C), rows in h-major order, padding=1."""
    B, H, W, C = x_nhwc.shape
    xp = jnp.pad(x_nhwc, ((0, 0), (1, 1), (1, 1), (0, 0)))
    cols = [xp[:, kh:kh + H, kw:kw + W, :] for kh in range(3) for kw in range(3)]
    return jnp.concatenate(cols, axis=-1).reshape(B, H * W, 9 * C)


# ----------------------------------------------------------------------------
# Full AuxHead forward (single fused pallas_call)
# ----------------------------------------------------------------------------
def auxhead_forward(x_nchw, params, out_h, out_w):
    B, C, H, W = x_nchw.shape
    NC = params["w_out"].shape[1]
    assert W % 8 == 0, "W must be a multiple of 8 (tile-aligned in-kernel reshape)"

    x = jnp.transpose(x_nchw, (0, 2, 3, 1))                        # NHWC

    # Fold BatchNorm (eval mode, eps=1e-5) into the conv weights + a per-channel shift.
    eps = 1e-5
    scale = params["bn_gamma"] * jax.lax.rsqrt(params["bn_var"] + eps)
    shift = (params["bn_beta"] - params["bn_mean"] * scale).reshape(1, C)
    w_scaled = (params["w_conv"] * scale[None, None, None, :]).reshape(9 * C, C)

    # Layout plumbing (HBM-side, handled by XLA for free); heavy math is in the kernel.
    xcol = _im2col_3x3(x).astype(jnp.bfloat16)                     # (B, H*W, 9C)
    wconv = w_scaled.astype(jnp.bfloat16)                          # (9C, C)
    woutT = params["w_out"].T.astype(jnp.bfloat16)                 # (NC, C)
    ry = jnp.asarray(_bilinear_matrix(out_h, H), jnp.bfloat16)     # (out_h, H)
    rxT = jnp.asarray(_bilinear_matrix(out_w, W).T, jnp.bfloat16)  # (W, out_w)

    kernel = functools.partial(_auxhead_kernel, H=H, W=W, C=C, NC=NC,
                               out_h=out_h, out_w=out_w)

    return pl.pallas_call(
        kernel,
        out_shape=jax.ShapeDtypeStruct((B, NC, out_h, out_w), jnp.float32),
        grid=(B,),
        in_specs=[
            pl.BlockSpec((1, H * W, 9 * C), lambda b: (b, 0, 0)),   # per-batch im2col
            pl.BlockSpec((9 * C, C), lambda b: (0, 0)),             # conv weight (BN folded)
            pl.BlockSpec((1, C), lambda b: (0, 0)),                 # BN shift
            pl.BlockSpec((NC, C), lambda b: (0, 0)),                # 1x1 conv_out weight^T
            pl.BlockSpec((out_h, H), lambda b: (0, 0)),             # H-resize matrix
            pl.BlockSpec((W, out_w), lambda b: (0, 0)),             # W-resize matrix^T
        ],
        out_specs=pl.BlockSpec((1, NC, out_h, out_w), lambda b: (b, 0, 0, 0)),
        compiler_params=pltpu.CompilerParams(dimension_semantics=("parallel",)),
    )(xcol, wconv, shift, woutT, ry, rxT)


# ----------------------------------------------------------------------------
# Pure-JAX f32 reference (same math, no Pallas) for a correctness cross-check
# ----------------------------------------------------------------------------
def _auxhead_reference(x_nchw, params, out_h, out_w):
    B, C, H, W = x_nchw.shape
    x = jnp.transpose(x_nchw, (0, 2, 3, 1))
    eps = 1e-5
    scale = params["bn_gamma"] * jax.lax.rsqrt(params["bn_var"] + eps)
    shift = params["bn_beta"] - params["bn_mean"] * scale
    w_scaled = (params["w_conv"] * scale[None, None, None, :]).reshape(9 * C, C)
    feat = jnp.clip(_im2col_3x3(x) @ w_scaled + shift[None, None, :], 0.0, 6.0)
    logits = (feat @ params["w_out"]).reshape(B, H, W, -1)         # (B, H, W, NC)
    ry = jnp.asarray(_bilinear_matrix(out_h, H))
    rx = jnp.asarray(_bilinear_matrix(out_w, W))
    t = jnp.einsum('yh,bhwn->bywn', ry, logits)
    return jnp.einsum('xw,bywn->bnyx', rx, t)                       # (B, NC, h, w)


# ----------------------------------------------------------------------------
# Deterministic parameter construction
# ----------------------------------------------------------------------------
def init_params(key, in_channels, num_classes):
    ks = jax.random.split(key, 6)
    return {
        # conv weight stored as (kh, kw, cin, cout); no bias (Conv2d(bias=False))
        "w_conv": 0.05 * jax.random.normal(ks[0], (3, 3, in_channels, in_channels),
                                           jnp.float32),
        "bn_gamma": 1.0 + 0.1 * jax.random.normal(ks[1], (in_channels,), jnp.float32),
        "bn_beta": 0.02 * jax.random.normal(ks[2], (in_channels,), jnp.float32),
        "bn_mean": 0.05 * jax.random.normal(ks[3], (in_channels,), jnp.float32),
        "bn_var": 1.0 + 0.1 * jnp.abs(jax.random.normal(ks[4], (in_channels,), jnp.float32)),
        # 1x1 conv_out weight (cin, num_classes); no bias
        "w_out": 0.1 * jax.random.normal(ks[5], (in_channels, num_classes), jnp.float32),
    }


if __name__ == "__main__":
    # module defaults: in_channels=64, num_classes=8; small spatial size
    B, C, H, W = 2, 64, 16, 16
    num_classes = 8
    out_h, out_w = 32, 32

    root = jax.random.PRNGKey(0)
    k_x, k_p = jax.random.split(root)
    x = jax.random.normal(k_x, (B, C, H, W), jnp.float32)
    params = init_params(k_p, C, num_classes)

    out = auxhead_forward(x, params, out_h, out_w)
    out = jax.block_until_ready(out)
    assert out.shape == (B, num_classes, out_h, out_w), out.shape
    assert bool(jnp.all(jnp.isfinite(out)))

    ref = _auxhead_reference(x, params, out_h, out_w)
    err = float(jnp.max(jnp.abs(out - ref)))
    assert err < 2e-1, f"max abs error vs f32 reference too large: {err}"

    print("KERNEL_OK")
</pallas_src>

<mosaic_0001>
module attributes {stable_mosaic.version = 11 : i64} {
  func.func @_auxhead_kernel(%arg0: i32, %arg1: memref<1x256x576xbf16, #tpu.memory_space<vmem>>, %arg2: memref<576x64xbf16, #tpu.memory_space<vmem>>, %arg3: memref<1x64xf32, #tpu.memory_space<vmem>>, %arg4: memref<8x64xbf16, #tpu.memory_space<vmem>>, %arg5: memref<32x16xbf16, #tpu.memory_space<vmem>>, %arg6: memref<16x32xbf16, #tpu.memory_space<vmem>>, %arg7: memref<1x8x32x32xf32, #tpu.memory_space<vmem>>) attributes {dimension_semantics = [#tpu.dimension_semantics<parallel>], iteration_bounds = array<i64: 2>, scalar_prefetch = 0 : i64, scratch_operands = 0 : i64, tpu.core_type = #tpu.core_type<tc>, window_params = [{transform_indices = @transform_0, window_bounds = array<i64: 1, 256, 576>}, {pipeline_mode = #tpu.pipeline_mode<synchronous>, transform_indices = @transform_1, window_bounds = array<i64: 576, 64>}, {pipeline_mode = #tpu.pipeline_mode<synchronous>, transform_indices = @transform_2, window_bounds = array<i64: 1, 64>}, {pipeline_mode = #tpu.pipeline_mode<synchronous>, transform_indices = @transform_3, window_bounds = array<i64: 8, 64>}, {pipeline_mode = #tpu.pipeline_mode<synchronous>, transform_indices = @transform_4, window_bounds = array<i64: 32, 16>}, {pipeline_mode = #tpu.pipeline_mode<synchronous>, transform_indices = @transform_5, window_bounds = array<i64: 16, 32>}, {transform_indices = @transform_6, window_bounds = array<i64: 1, 8, 32, 32>}]} {
    %c0 = arith.constant 0 : index
    %c0_0 = arith.constant 0 : index
    %c0_1 = arith.constant 0 : index
    %0 = vector.load %arg1[%c0, %c0_0, %c0_1] : memref<1x256x576xbf16, #tpu.memory_space<vmem>>, vector<1x256x576xbf16>
    %1 = vector.shape_cast %0 : vector<1x256x576xbf16> to vector<256x576xbf16>
    %c0_2 = arith.constant 0 : index
    %c0_3 = arith.constant 0 : index
    %2 = vector.load %arg2[%c0_2, %c0_3] : memref<576x64xbf16, #tpu.memory_space<vmem>>, vector<576x64xbf16>
    %cst = arith.constant dense<0.000000e+00> : vector<256x64xf32>
    %3 = tpu.matmul %1, %2, %cst {dimension_numbers = #tpu.dot_dimension_numbers<[1], [0], [0], [1], [0, 0, 1, 1], [], []>} : vector<256x576xbf16>, vector<576x64xbf16>, vector<256x64xf32> -> vector<256x64xf32>
    %c0_4 = arith.constant 0 : index
    %c0_5 = arith.constant 0 : index
    %4 = vector.load %arg3[%c0_4, %c0_5] : memref<1x64xf32, #tpu.memory_space<vmem>>, vector<1x64xf32>
    %5 = vector.broadcast %4 : vector<1x64xf32> to vector<256x64xf32>
    %6 = arith.addf %3, %5 : vector<256x64xf32>
    %cst_6 = arith.constant 0.000000e+00 : f32
    %cst_7 = arith.constant 6.000000e+00 : f32
    %7 = vector.broadcast %cst_6 : f32 to vector<256x64xf32>
    %8 = arith.maximumf %7, %6 : vector<256x64xf32>
    %9 = vector.broadcast %cst_7 : f32 to vector<256x64xf32>
    %10 = arith.minimumf %9, %8 : vector<256x64xf32>
    %11 = vector.shape_cast %10 : vector<256x64xf32> to vector<16x16x64xf32>
    %12 = arith.truncf %11 : vector<16x16x64xf32> to vector<16x16x64xbf16>
    %c0_8 = arith.constant 0 : index
    %c0_9 = arith.constant 0 : index
    %13 = vector.load %arg4[%c0_8, %c0_9] : memref<8x64xbf16, #tpu.memory_space<vmem>>, vector<8x64xbf16>
    %14 = vector.shape_cast %13 : vector<8x64xbf16> to vector<1x8x64xbf16>
    %15 = vector.shape_cast %14 : vector<1x8x64xbf16> to vector<1x8x64xbf16>
    %16 = vector.broadcast %15 : vector<1x8x64xbf16> to vector<16x8x64xbf16>
    "tpu.trace_start"() <{level = 10 : i32, message = "hnc,hwc->hnw"}> : () -> ()
    %cst_10 = arith.constant dense<0.000000e+00> : vector<16x8x16xf32>
    %17 = tpu.matmul %16, %12, %cst_10 {dimension_numbers = #tpu.dot_dimension_numbers<[2], [2], [1], [1], [0, 0, 0, 1, 1, 1], [0], [0]>} : vector<16x8x64xbf16>, vector<16x16x64xbf16>, vector<16x8x16xf32> -> vector<16x8x16xf32>
    "tpu.trace_stop"() : () -> ()
    %c0_11 = arith.constant 0 : index
    %c0_12 = arith.constant 0 : index
    %18 = vector.load %arg5[%c0_11, %c0_12] : memref<32x16xbf16, #tpu.memory_space<vmem>>, vector<32x16xbf16>
    %c0_13 = arith.constant 0 : index
    %c0_14 = arith.constant 0 : index
    %19 = vector.load %arg6[%c0_13, %c0_14] : memref<16x32xbf16, #tpu.memory_space<vmem>>, vector<16x32xbf16>
    %20 = vector.extract_strided_slice %17 {offsets = [0, 0, 0], sizes = [16, 1, 16], strides = [1, 1, 1]} : vector<16x8x16xf32> to vector<16x1x16xf32>
    %21 = vector.shape_cast %20 : vector<16x1x16xf32> to vector<16x16xf32>
    %22 = arith.truncf %21 : vector<16x16xf32> to vector<16x16xbf16>
    %cst_15 = arith.constant dense<0.000000e+00> : vector<32x16xf32>
    %23 = tpu.matmul %18, %22, %cst_15 {dimension_numbers = #tpu.dot_dimension_numbers<[1], [0], [0], [1], [0, 0, 1, 1], [], []>} : vector<32x16xbf16>, vector<16x16xbf16>, vector<32x16xf32> -> vector<32x16xf32>
    %24 = arith.truncf %23 : vector<32x16xf32> to vector<32x16xbf16>
    %cst_16 = arith.constant dense<0.000000e+00> : vector<32x32xf32>
    %25 = tpu.matmul %24, %19, %cst_16 {dimension_numbers = #tpu.dot_dimension_numbers<[1], [0], [0], [1], [0, 0, 1, 1], [], []>} : vector<32x16xbf16>, vector<16x32xbf16>, vector<32x32xf32> -> vector<32x32xf32>
    %c0_17 = arith.constant 0 : index
    %c0_18 = arith.constant 0 : index
    %c0_19 = arith.constant 0 : index
    %c0_20 = arith.constant 0 : index
    %26 = vector.load %arg7[%c0_17, %c0_18, %c0_19, %c0_20] : memref<1x8x32x32xf32, #tpu.memory_space<vmem>>, vector<1x1x32x32xf32>
    %27 = vector.shape_cast %26 : vector<1x1x32x32xf32> to vector<32x32xf32>
    %28 = vector.shape_cast %25 : vector<32x32xf32> to vector<1x1x32x32xf32>
    tpu.vector_store %arg7[%c0_17, %c0_18, %c0_19, %c0_20], %28 {strides = array<i32>} : memref<1x8x32x32xf32, #tpu.memory_space<vmem>>, vector<1x1x32x32xf32>,
    %29 = vector.extract_strided_slice %17 {offsets = [0, 1, 0], sizes = [16, 1, 16], strides = [1, 1, 1]} : vector<16x8x16xf32> to vector<16x1x16xf32>
    %30 = vector.shape_cast %29 : vector<16x1x16xf32> to vector<16x16xf32>
    %31 = arith.truncf %30 : vector<16x16xf32> to vector<16x16xbf16>
    %cst_21 = arith.constant dense<0.000000e+00> : vector<32x16xf32>
    %32 = tpu.matmul %18, %31, %cst_21 {dimension_numbers = #tpu.dot_dimension_numbers<[1], [0], [0], [1], [0, 0, 1, 1], [], []>} : vector<32x16xbf16>, vector<16x16xbf16>, vector<32x16xf32> -> vector<32x16xf32>
    %33 = arith.truncf %32 : vector<32x16xf32> to vector<32x16xbf16>
    %cst_22 = arith.constant dense<0.000000e+00> : vector<32x32xf32>
    %34 = tpu.matmul %33, %19, %cst_22 {dimension_numbers = #tpu.dot_dimension_numbers<[1], [0], [0], [1], [0, 0, 1, 1], [], []>} : vector<32x16xbf16>, vector<16x32xbf16>, vector<32x32xf32> -> vector<32x32xf32>
    %c0_23 = arith.constant 0 : index
    %c1 = arith.constant 1 : index
    %c0_24 = arith.constant 0 : index
    %c0_25 = arith.constant 0 : index
    %35 = vector.load %arg7[%c0_23, %c1, %c0_24, %c0_25] : memref<1x8x32x32xf32, #tpu.memory_space<vmem>>, vector<1x1x32x32xf32>
    %36 = vector.shape_cast %35 : vector<1x1x32x32xf32> to vector<32x32xf32>
    %37 = vector.shape_cast %34 : vector<32x32xf32> to vector<1x1x32x32xf32>
    tpu.vector_store %arg7[%c0_23, %c1, %c0_24, %c0_25], %37 {strides = array<i32>} : memref<1x8x32x32xf32, #tpu.memory_space<vmem>>, vector<1x1x32x32xf32>,
    %38 = vector.extract_strided_slice %17 {offsets = [0, 2, 0], sizes = [16, 1, 16], strides = [1, 1, 1]} : vector<16x8x16xf32> to vector<16x1x16xf32>
    %39 = vector.shape_cast %38 : vector<16x1x16xf32> to vector<16x16xf32>
    %40 = arith.truncf %39 : vector<16x16xf32> to vector<16x16xbf16>
    %cst_26 = arith.constant dense<0.000000e+00> : vector<32x16xf32>
    %41 = tpu.matmul %18, %40, %cst_26 {dimension_numbers = #tpu.dot_dimension_numbers<[1], [0], [0], [1], [0, 0, 1, 1], [], []>} : vector<32x16xbf16>, vector<16x16xbf16>, vector<32x16xf32> -> vector<32x16xf32>
    %42 = arith.truncf %41 : vector<32x16xf32> to vector<32x16xbf16>
    %cst_27 = arith.constant dense<0.000000e+00> : vector<32x32xf32>
    %43 = tpu.matmul %42, %19, %cst_27 {dimension_numbers = #tpu.dot_dimension_numbers<[1], [0], [0], [1], [0, 0, 1, 1], [], []>} : vector<32x16xbf16>, vector<16x32xbf16>, vector<32x32xf32> -> vector<32x32xf32>
    %c0_28 = arith.constant 0 : index
    %c2 = arith.constant 2 : index
    %c0_29 = arith.constant 0 : index
    %c0_30 = arith.constant 0 : index
    %44 = vector.load %arg7[%c0_28, %c2, %c0_29, %c0_30] : memref<1x8x32x32xf32, #tpu.memory_space<vmem>>, vector<1x1x32x32xf32>
    %45 = vector.shape_cast %44 : vector<1x1x32x32xf32> to vector<32x32xf32>
    %46 = vector.shape_cast %43 : vector<32x32xf32> to vector<1x1x32x32xf32>
    tpu.vector_store %arg7[%c0_28, %c2, %c0_29, %c0_30], %46 {strides = array<i32>} : memref<1x8x32x32xf32, #tpu.memory_space<vmem>>, vector<1x1x32x32xf32>,
    %47 = vector.extract_strided_slice %17 {offsets = [0, 3, 0], sizes = [16, 1, 16], strides = [1, 1, 1]} : vector<16x8x16xf32> to vector<16x1x16xf32>
    %48 = vector.shape_cast %47 : vector<16x1x16xf32> to vector<16x16xf32>
    %49 = arith.truncf %48 : vector<16x16xf32> to vector<16x16xbf16>
    %cst_31 = arith.constant dense<0.000000e+00> : vector<32x16xf32>
    %50 = tpu.matmul %18, %49, %cst_31 {dimension_numbers = #tpu.dot_dimension_numbers<[1], [0], [0], [1], [0, 0, 1, 1], [], []>} : vector<32x16xbf16>, vector<16x16xbf16>, vector<32x16xf32> -> vector<32x16xf32>
    %51 = arith.truncf %50 : vector<32x16xf32> to vector<32x16xbf16>
    %cst_32 = arith.constant dense<0.000000e+00> : vector<32x32xf32>
    %52 = tpu.matmul %51, %19, %cst_32 {dimension_numbers = #tpu.dot_dimension_numbers<[1], [0], [0], [1], [0, 0, 1, 1], [], []>} : vector<32x16xbf16>, vector<16x32xbf16>, vector<32x32xf32> -> vector<32x32xf32>
    %c0_33 = arith.constant 0 : index
    %c3 = arith.constant 3 : index
    %c0_34 = arith.constant 0 : index
    %c0_35 = arith.constant 0 : index
    %53 = vector.load %arg7[%c0_33, %c3, %c0_34, %c0_35] : memref<1x8x32x32xf32, #tpu.memory_space<vmem>>, vector<1x1x32x32xf32>
    %54 = vector.shape_cast %53 : vector<1x1x32x32xf32> to vector<32x32xf32>
    %55 = vector.shape_cast %52 : vector<32x32xf32> to vector<1x1x32x32xf32>
    tpu.vector_store %arg7[%c0_33, %c3, %c0_34, %c0_35], %55 {strides = array<i32>} : memref<1x8x32x32xf32, #tpu.memory_space<vmem>>, vector<1x1x32x32xf32>,
    %56 = vector.extract_strided_slice %17 {offsets = [0, 4, 0], sizes = [16, 1, 16], strides = [1, 1, 1]} : vector<16x8x16xf32> to vector<16x1x16xf32>
    %57 = vector.shape_cast %56 : vector<16x1x16xf32> to vector<16x16xf32>
    %58 = arith.truncf %57 : vector<16x16xf32> to vector<16x16xbf16>
    %cst_36 = arith.constant dense<0.000000e+00> : vector<32x16xf32>
    %59 = tpu.matmul %18, %58, %cst_36 {dimension_numbers = #tpu.dot_dimension_numbers<[1], [0], [0], [1], [0, 0, 1, 1], [], []>} : vector<32x16xbf16>, vector<16x16xbf16>, vector<32x16xf32> -> vector<32x16xf32>
    %60 = arith.truncf %59 : vector<32x16xf32> to vector<32x16xbf16>
    %cst_37 = arith.constant dense<0.000000e+00> : vector<32x32xf32>
    %61 = tpu.matmul %60, %19, %cst_37 {dimension_numbers = #tpu.dot_dimension_numbers<[1], [0], [0], [1], [0, 0, 1, 1], [], []>} : vector<32x16xbf16>, vector<16x32xbf16>, vector<32x32xf32> -> vector<32x32xf32>
    %c0_38 = arith.constant 0 : index
    %c4 = arith.constant 4 : index
    %c0_39 = arith.constant 0 : index
    %c0_40 = arith.constant 0 : index
    %62 = vector.load %arg7[%c0_38, %c4, %c0_39, %c0_40] : memref<1x8x32x32xf32, #tpu.memory_space<vmem>>, vector<1x1x32x32xf32>
    %63 = vector.shape_cast %62 : vector<1x1x32x32xf32> to vector<32x32xf32>
    %64 = vector.shape_cast %61 : vector<32x32xf32> to vector<1x1x32x32xf32>
    tpu.vector_store %arg7[%c0_38, %c4, %c0_39, %c0_40], %64 {strides = array<i32>} : memref<1x8x32x32xf32, #tpu.memory_space<vmem>>, vector<1x1x32x32xf32>,
    %65 = vector.extract_strided_slice %17 {offsets = [0, 5, 0], sizes = [16, 1, 16], strides = [1, 1, 1]} : vector<16x8x16xf32> to vector<16x1x16xf32>
    %66 = vector.shape_cast %65 : vector<16x1x16xf32> to vector<16x16xf32>
    %67 = arith.truncf %66 : vector<16x16xf32> to vector<16x16xbf16>
    %cst_41 = arith.constant dense<0.000000e+00> : vector<32x16xf32>
    %68 = tpu.matmul %18, %67, %cst_41 {dimension_numbers = #tpu.dot_dimension_numbers<[1], [0], [0], [1], [0, 0, 1, 1], [], []>} : vector<32x16xbf16>, vector<16x16xbf16>, vector<32x16xf32> -> vector<32x16xf32>
    %69 = arith.truncf %68 : vector<32x16xf32> to vector<32x16xbf16>
    %cst_42 = arith.constant dense<0.000000e+00> : vector<32x32xf32>
    %70 = tpu.matmul %69, %19, %cst_42 {dimension_numbers = #tpu.dot_dimension_numbers<[1], [0], [0], [1], [0, 0, 1, 1], [], []>} : vector<32x16xbf16>, vector<16x32xbf16>, vector<32x32xf32> -> vector<32x32xf32>
    %c0_43 = arith.constant 0 : index
    %c5 = arith.constant 5 : index
    %c0_44 = arith.constant 0 : index
    %c0_45 = arith.constant 0 : index
    %71 = vector.load %arg7[%c0_43, %c5, %c0_44, %c0_45] : memref<1x8x32x32xf32, #tpu.memory_space<vmem>>, vector<1x1x32x32xf32>
    %72 = vector.shape_cast %71 : vector<1x1x32x32xf32> to vector<32x32xf32>
    %73 = vector.shape_cast %70 : vector<32x32xf32> to vector<1x1x32x32xf32>
    tpu.vector_store %arg7[%c0_43, %c5, %c0_44, %c0_45], %73 {strides = array<i32>} : memref<1x8x32x32xf32, #tpu.memory_space<vmem>>, vector<1x1x32x32xf32>,
    %74 = vector.extract_strided_slice %17 {offsets = [0, 6, 0], sizes = [16, 1, 16], strides = [1, 1, 1]} : vector<16x8x16xf32> to vector<16x1x16xf32>
    %75 = vector.shape_cast %74 : vector<16x1x16xf32> to vector<16x16xf32>
    %76 = arith.truncf %75 : vector<16x16xf32> to vector<16x16xbf16>
    %cst_46 = arith.constant dense<0.000000e+00> : vector<32x16xf32>
    %77 = tpu.matmul %18, %76, %cst_46 {dimension_numbers = #tpu.dot_dimension_numbers<[1], [0], [0], [1], [0, 0, 1, 1], [], []>} : vector<32x16xbf16>, vector<16x16xbf16>, vector<32x16xf32> -> vector<32x16xf32>
    %78 = arith.truncf %77 : vector<32x16xf32> to vector<32x16xbf16>
    %cst_47 = arith.constant dense<0.000000e+00> : vector<32x32xf32>
    %79 = tpu.matmul %78, %19, %cst_47 {dimension_numbers = #tpu.dot_dimension_numbers<[1], [0], [0], [1], [0, 0, 1, 1], [], []>} : vector<32x16xbf16>, vector<16x32xbf16>, vector<32x32xf32> -> vector<32x32xf32>
    %c0_48 = arith.constant 0 : index
    %c6 = arith.constant 6 : index
    %c0_49 = arith.constant 0 : index
    %c0_50 = arith.constant 0 : index
    %80 = vector.load %arg7[%c0_48, %c6, %c0_49, %c0_50] : memref<1x8x32x32xf32, #tpu.memory_space<vmem>>, vector<1x1x32x32xf32>
    %81 = vector.shape_cast %80 : vector<1x1x32x32xf32> to vector<32x32xf32>
    %82 = vector.shape_cast %79 : vector<32x32xf32> to vector<1x1x32x32xf32>
    tpu.vector_store %arg7[%c0_48, %c6, %c0_49, %c0_50], %82 {strides = array<i32>} : memref<1x8x32x32xf32, #tpu.memory_space<vmem>>, vector<1x1x32x32xf32>,
    %83 = vector.extract_strided_slice %17 {offsets = [0, 7, 0], sizes = [16, 1, 16], strides = [1, 1, 1]} : vector<16x8x16xf32> to vector<16x1x16xf32>
    %84 = vector.shape_cast %83 : vector<16x1x16xf32> to vector<16x16xf32>
    %85 = arith.truncf %84 : vector<16x16xf32> to vector<16x16xbf16>
    %cst_51 = arith.constant dense<0.000000e+00> : vector<32x16xf32>
    %86 = tpu.matmul %18, %85, %cst_51 {dimension_numbers = #tpu.dot_dimension_numbers<[1], [0], [0], [1], [0, 0, 1, 1], [], []>} : vector<32x16xbf16>, vector<16x16xbf16>, vector<32x16xf32> -> vector<32x16xf32>
    %87 = arith.truncf %86 : vector<32x16xf32> to vector<32x16xbf16>
    %cst_52 = arith.constant dense<0.000000e+00> : vector<32x32xf32>
    %88 = tpu.matmul %87, %19, %cst_52 {dimension_numbers = #tpu.dot_dimension_numbers<[1], [0], [0], [1], [0, 0, 1, 1], [], []>} : vector<32x16xbf16>, vector<16x32xbf16>, vector<32x32xf32> -> vector<32x32xf32>
    %c0_53 = arith.constant 0 : index
    %c7 = arith.constant 7 : index
    %c0_54 = arith.constant 0 : index
    %c0_55 = arith.constant 0 : index
    %89 = vector.load %arg7[%c0_53, %c7, %c0_54, %c0_55] : memref<1x8x32x32xf32, #tpu.memory_space<vmem>>, vector<1x1x32x32xf32>
    %90 = vector.shape_cast %89 : vector<1x1x32x32xf32> to vector<32x32xf32>
    %91 = vector.shape_cast %88 : vector<32x32xf32> to vector<1x1x32x32xf32>
    tpu.vector_store %arg7[%c0_53, %c7, %c0_54, %c0_55], %91 {strides = array<i32>} : memref<1x8x32x32xf32, #tpu.memory_space<vmem>>, vector<1x1x32x32xf32>,
    return
  }
  func.func @transform_0(%arg0: i32) -> (i32, i32, i32) {
    %c0_i32 = arith.constant 0 : i32
    %c0_i32_0 = arith.constant 0 : i32
    %c0_i32_1 = arith.constant 0 : i32
    return %arg0, %c0_i32, %c0_i32_0 : i32, i32, i32
  }
  func.func @transform_1(%arg0: i32) -> (i32, i32) {
    %c0_i32 = arith.constant 0 : i32
    %c0_i32_0 = arith.constant 0 : i32
    %c0_i32_1 = arith.constant 0 : i32
    return %c0_i32, %c0_i32_0 : i32, i32
  }
  func.func @transform_2(%arg0: i32) -> (i32, i32) {
    %c0_i32 = arith.constant 0 : i32
    %c0_i32_0 = arith.constant 0 : i32
    %c0_i32_1 = arith.constant 0 : i32
    return %c0_i32, %c0_i32_0 : i32, i32
  }
  func.func @transform_3(%arg0: i32) -> (i32, i32) {
    %c0_i32 = arith.constant 0 : i32
    %c0_i32_0 = arith.constant 0 : i32
    %c0_i32_1 = arith.constant 0 : i32
    return %c0_i32, %c0_i32_0 : i32, i32
  }
  func.func @transform_4(%arg0: i32) -> (i32, i32) {
    %c0_i32 = arith.constant 0 : i32
    %c0_i32_0 = arith.constant 0 : i32
    %c0_i32_1 = arith.constant 0 : i32
    return %c0_i32, %c0_i32_0 : i32, i32
  }
  func.func @transform_5(%arg0: i32) -> (i32, i32) {
    %c0_i32 = arith.constant 0 : i32
    %c0_i32_0 = arith.constant 0 : i32
    %c0_i32_1 = arith.constant 0 : i32
    return %c0_i32, %c0_i32_0 : i32, i32
  }
  func.func @transform_6(%arg0: i32) -> (i32, i32, i32, i32) {
    %c0_i32 = arith.constant 0 : i32
    %c0_i32_0 = arith.constant 0 : i32
    %c0_i32_1 = arith.constant 0 : i32
    %c0_i32_2 = arith.constant 0 : i32
    return %arg0, %c0_i32, %c0_i32_0, %c0_i32_1 : i32, i32, i32, i32
  }
}

</mosaic_0001>

<bundles_post_ra>
// kernel: tpu_custom_call.1
= control target key start
LH: loop header
LB: loop body
LE: loop exit
PB: predicated region body
PF: predicated region fallthrough
CT: control target
= control target key end

     0   :  { %11 = vsyncpa [#allocation3], 0  ;;  %s4686_s0 = inlined_call_operand.vmem [shape: bf16[2,256,576], index: 0, kind: input, shape index: {}]   ;;  %s4687_s1 = inlined_call_operand.vmem [shape: bf16[576,64], index: 1, kind: input, shape index: {}]   ;;  %s4688_s2 = inlined_call_operand.vmem [shape: f32[1,64], index: 2, kind: input, shape index: {}]   ;;  %s4689_s3 = inlined_call_operand.vmem [shape: bf16[8,64], index: 3, kind: input, shape index: {}]   ;;  %s4690_s4 = inlined_call_operand.vmem [shape: bf16[32,16], index: 4, kind: input, shape index: {}]   ;;  %s4691_s5 = inlined_call_operand.vmem [shape: bf16[16,32], index: 5, kind: input, shape index: {}]   ;;  %s4692_s6 = inlined_call_operand.hbm [shape: f32[2,8,32,32], index: 6, kind: output, shape index: {}]  }
   0x1   :  { %13 = vsyncpa [#allocation3 + $0x1], 0  ;;  %s3623_s21 = smov 0   ;;  %s3625_s22 = smov 0  }
   0x2   :  { %s3627_s23 = smov 0   ;;  %s3629_s24 = smov 0  }
   0x3 LB: > { %s3644_s25 = sadd.s32 4294967295, %s3584_s24   ;;  %s2779_s26 = sadd.s32 4294967294, %s3584_s24   ;;  %s3584_s24 = sphi %s3629_s24, %s4698_s24   ;;  %s3580_s23 = sphi %s3627_s23, %s4697_s23   ;;  %s3576_s22 = sphi %s3625_s22, %s4696_s22   ;;  %s3572_s21 = sphi %s3623_s21, %s4695_s21  }
   0x4   : > { %s3648_s27 = sadd.s32 1, %s3584_s24   ;;  %s157_s28 = sadd.s32 1, %s3580_s23 }
   0x5   : > { %s154_s29 = ssub.s32 %s3584_s24, %s3648_s27  ;;  %p167_p0 = scmp.ne.s32.totalorder %s3580_s23, %s3576_s22 }
   0x6   : > { %p155_p1 = scmp.eq.s32.totalorder %s154_s29, 0  ;;  %p168_p2 = scmp.eq.s32.totalorder %s3644_s25, 1 }
   0x7   : > { %p173_p3 = scmp.ne.s32.totalorder %s3576_s22, %s3572_s21  ;;  %p174_p4 = scmp.eq.s32.totalorder %s2779_s26, 1 }
   0x8   : > { %s3659_s30 = scalar_select %p155_p1, %s3580_s23, %s157_s28  }
   0x9   : > { %p3661_p5 = por %p168_p2, %p167_p0  ;;  %p3665_p6 = por %p174_p4, %p173_p3 }
   0xa   : > { %p2782_p7 = scmp.ge.s32.totalorder %s3584_s24, 1  ;;  %p215_p8 = scmp.lt.s32.totalorder %s3584_s24, 3 }
   0xc   : > { %p216_p9 = pnand %p2782_p7, %p215_p8 }
   0xd   : > { %p245_p10 = scmp.lt.s32.totalorder (!%p216_p9), %s3644_s25, 1  ;;  %s242_s10 = sand.u32 (!%p216_p9), 1, %s3576_s22  }
   0xe   : > { %219 = sbr.rel (%p216_p9) target bundleno = 1657 (0x679), region = 44  ;;  %s2783_s11 = sshll.u32 (!%p216_p9), %s242_s10, 8 }
   0xf   : > { %s3477_s12 = sshll.u32 (!%p216_p9), %s3644_s25, 8  ;;  %s3542_s28 = scalar_lea.hbm (!%p216_p9), %s4692_s6, 512 }
  0x10   : > { %s2713_s16 = scalar_lea.hbm (!%p216_p9), %s4692_s6, %s3477_s12 }
  0x11   : > { %s2716_s17 = sshll.u32 (!%p216_p9), %s2713_s16, 4  ;;  %s2717_s17 = int_to_ptr.hbm [resolvable:$true] %s2716_s17 }
  0x12   : > { %s3536_s18 = sshra.s32 (!%p216_p9), %s2717_s17, 4  ;;  %s3537_s18 = int_to_ptr.hbm [resolvable:$true] %s3536_s18 }
  0x13   : > { %v3445_v0 = vld [vmem:[%s4687_s1 + $0x38] sm:$0xff]  ;;  %v3444_v4 = vld [vmem:[%s4687_s1 + $0x30] sm:$0xff]  ;;  %v3443_v8 = vld [vmem:[%s4687_s1 + $0x28] sm:$0xff]  ;;  %s246_s15 = scalar_select %p245_p10, %s3644_s25, 1  ;;  %vm1039_vm0 = vcmask 523264   ;;  %vm2034_vm1 = vcmask 1041409  }
  0x14   : > { %v3461_v1 = vld [vmem:[%s4687_s1 + $0xb8] sm:$0xff]  ;;  %1088 = vmatpush.bf16.msra.mxu0 %v3445_v0  ;;  %v3460_v5 = vld [vmem:[%s4687_s1 + $0xb0] sm:$0xff]  ;;  %v3459_v9 = vld [vmem:[%s4687_s1 + $0xa8] sm:$0xff]  ;;  %vm2037_vm2 = vcmask 1042434   ;;  %vm2040_vm3 = vcmask 1043459   ;;  %vm2043_vm4 = vcmask 1044484   ;;  %p3543_p0 = scmp.lt.s32.totalorder %s3537_s18, %s4692_s6 }
  0x15   : > { %v3453_v2 = vld [vmem:[%s4687_s1 + $0x78] sm:$0xff]  ;;  %1266 = vmatpush.bf16.msra.mxu2 %v3461_v1  ;;  %v3452_v6 = vld [vmem:[%s4687_s1 + $0x70] sm:$0xff]  ;;  %v3451_v10 = vld [vmem:[%s4687_s1 + $0x68] sm:$0xff]  ;;  %s3478_s9 = smul.u32 640, %s246_s15  ;;  %vm2046_vm5 = vcmask 1045509   ;;  %vm2049_vm6 = vcmask 1046534  }
  0x16   : > { %v3469_v3 = vld [vmem:[%s4687_s1 + $0xf8] sm:$0xff]  ;;  %1177 = vmatpush.bf16.msra.mxu1 %v3453_v2  ;;  %v3468_v7 = vld [vmem:[%s4687_s1 + $0xf0] sm:$0xff]  ;;  %v3467_v11 = vld [vmem:[%s4687_s1 + $0xe8] sm:$0xff]  ;;  %vm2052_vm7 = vcmask 1047559   ;;  %vm2070_vm8 = vcmask 130048   ;;  %vm2129_vm9 = vcmask 261120  }
  0x17   : > { %1355 = vmatpush.bf16.msra.mxu3 %v3469_v3  ;;  %v3442_v12 = vld [vmem:[%s4687_s1 + $0x20] sm:$0xff]  ;;  %v3441_v16 = vld [vmem:[%s4687_s1 + $0x18] sm:$0xff]  ;;  %v3440_v20 = vld [vmem:[%s4687_s1 + $0x10] sm:$0xff]  ;;  %s3754_s20 = scalar_lea.vmem %s4686_s0, %s3478_s9  ;;  %s4552_s9 = scalar_lea.vmem [#allocation2], %s2783_s11 }
  0x18   : > { %1089 = vmatpush.bf16.msra.mxu0 %v3444_v4  ;;  %v3458_v13 = vld [vmem:[%s4687_s1 + $0xa0] sm:$0xff]  ;;  %v3457_v17 = vld [vmem:[%s4687_s1 + $0x98] sm:$0xff]  ;;  %v3456_v21 = vld [vmem:[%s4687_s1 + $0x90] sm:$0xff]  ;;  %s2702_s25 = scalar_lea.sflag [#allocation3], %s242_s10  ;;  %s3538_s15 = scalar_lea.hbm %s3537_s18, 256 }
  0x19   : > { %1267 = vmatpush.bf16.msra.mxu2 %v3460_v5  ;;  %v3450_v14 = vld [vmem:[%s4687_s1 + $0x60] sm:$0xff]  ;;  %v3449_v18 = vld [vmem:[%s4687_s1 + $0x58] sm:$0xff]  ;;  %v3448_v22 = vld [vmem:[%s4687_s1 + $0x50] sm:$0xff]  ;;  %p3539_p11 = scmp.ne.s32.totalorder %s3537_s18, %s3538_s15  ;;  %p3544_p1 = scmp.lt.s32.totalorder %s3542_s28, %s3538_s15 }
  0x1a   : > { %1178 = vmatpush.bf16.msra.mxu1 %v3452_v6  ;;  %v3466_v15 = vld [vmem:[%s4687_s1 + $0xe0] sm:$0xff]  ;;  %v3465_v19 = vld [vmem:[%s4687_s1 + $0xd8] sm:$0xff]  ;;  %v3464_v23 = vld [vmem:[%s4687_s1 + $0xd0] sm:$0xff] }
  0x1b   : > { %1356 = vmatpush.bf16.msra.mxu3 %v3468_v7  ;;  %v3439_v24 = vld [vmem:[%s4687_s1 + $0x8] sm:$0xff]  ;;  %v3438_v28 = vld [vmem:[%s4687_s1] sm:$0xff]  ;;  %v3360_v33 = vld [vmem:[%s3754_s20 + $0x10] sm:$0xf0]  ;;  %p3540_p12 = pnand %p3539_p11, %p3661_p5  ;;  %p3545_p2 = por %p3544_p1, %p3543_p0 }
  0x1c   : > { %1090 = vmatpush.bf16.msra.mxu0 %v3443_v8  ;;  %v3455_v25 = vld [vmem:[%s4687_s1 + $0x88] sm:$0xff]  ;;  %v3454_v29 = vld [vmem:[%s4687_s1 + $0x80] sm:$0xff]  ;;  %v3361_v35 = vld [vmem:[%s3754_s20 + $0x18] sm:$0xf0] }
  0x1d   : > { %1268 = vmatpush.bf16.msra.mxu2 %v3459_v9  ;;  %v3447_v26 = vld [vmem:[%s4687_s1 + $0x48] sm:$0xff]  ;;  %v3446_v30 = vld [vmem:[%s4687_s1 + $0x40] sm:$0xff]  ;;  %v2789_v37 = vld [vmem:[%s3754_s20 + $0x14] sm:$0xf0]  ;;  %p3541_p13 = pneg %p3540_p12 }
  0x1e   : > { %1179 = vmatpush.bf16.msra.mxu1 %v3451_v10  ;;  %v3463_v27 = vld [vmem:[%s4687_s1 + $0xc8] sm:$0xff]  ;;  %v3462_v31 = vld [vmem:[%s4687_s1 + $0xc0] sm:$0xff]  ;;  %v3365_v45 = vld [vmem:[%s3754_s20 + $0x38] sm:$0xf0] }
  0x1f   : > { %1357 = vmatpush.bf16.msra.mxu3 %v3467_v11  ;;  %v2787_v32 = vld [vmem:[%s3754_s20] sm:$0xf]  ;;  %v2795_v34 = vld [vmem:[%s3754_s20 + $0x8] sm:$0xf]  ;;  %v3358_v36 = vld [vmem:[%s3754_s20 + $0x4] sm:$0xf]  ;;  %p3546_p3 = pnand %p3545_p2, %p3541_p13 }
  0x20   : > { %1091 = vmatpush.bf16.msra.mxu0 %v3442_v12  ;;  %v3359_v38 = vld [vmem:[%s3754_s20 + $0xc] sm:$0xf]  ;;  %v2797_v39 = vld [vmem:[%s3754_s20 + $0x1c] sm:$0xf0]  ;;  %v2788_v40 = vor.u32 %v3360_v33, %v2787_v32  ;;  %v2796_v41 = vor.u32 %v3361_v35, %v2795_v34  ;;  %v2792_v42 = vor.u32 %v3358_v36, %v2789_v37  ;;  %v2807_v44 = vld [vmem:[%s3754_s20 + $0x28] sm:$0xf] }
  0x21   : > { %1269 = vmatpush.bf16.msra.mxu2 %v3458_v13  ;;  %v2800_v43 = vor.u32 %v3359_v38, %v2797_v39  ;;  %v2815_v46 = vld [vmem:[%s3754_s20 + $0x30] sm:$0xf]  ;;  %v3366_v47 = vld [vmem:[%s3754_s20 + $0x40] sm:$0xf0]  ;;  %v3363_v48 = vld [vmem:[%s3754_s20 + $0x2c] sm:$0xf]  ;;  %v2808_v52 = vor.u32 %v3365_v45, %v2807_v44 }
  0x22   : > { %1180 = vmatpush.bf16.msra.mxu1 %v3450_v14  ;;  %v2809_v49 = vld [vmem:[%s3754_s20 + $0x3c] sm:$0xf0]  ;;  %v3364_v50 = vld [vmem:[%s3754_s20 + $0x34] sm:$0xf]  ;;  %v2817_v51 = vld [vmem:[%s3754_s20 + $0x44] sm:$0xf0]  ;;  %v2816_v53 = vor.u32 %v3366_v47, %v2815_v46 }
  0x23   : > { %1358 = vmatpush.bf16.msra.mxu3 %v3466_v15  ;;  %v2812_v54 = vor.u32 %v3363_v48, %v2809_v49  ;;  %v2820_v55 = vor.u32 %v3364_v50, %v2817_v51  ;;  %v2827_v56 = vld [vmem:[%s3754_s20 + $0x50] sm:$0xf]  ;;  %v3370_v57 = vld [vmem:[%s3754_s20 + $0x60] sm:$0xf0]  ;;  %v2835_v58 = vld [vmem:[%s3754_s20 + $0x58] sm:$0xf] }
  0x24   : > { %1092 = vmatpush.bf16.msra.mxu0 %v3441_v16  ;;  %v3371_v59 = vld [vmem:[%s3754_s20 + $0x68] sm:$0xf0]  ;;  %v3368_v60 = vld [vmem:[%s3754_s20 + $0x54] sm:$0xf]  ;;  %v2829_v61 = vld [vmem:[%s3754_s20 + $0x64] sm:$0xf0]  ;;  %v2828_v0 = vor.u32 %v3370_v57, %v2827_v56 }
  0x25   : > { %1270 = vmatpush.bf16.msra.mxu2 %v3457_v17  ;;  %v3369_v62 = vld [vmem:[%s3754_s20 + $0x5c] sm:$0xf]  ;;  %v2837_v63 = vld [vmem:[%s3754_s20 + $0x6c] sm:$0xf0]  ;;  %v2836_v1 = vor.u32 %v3371_v59, %v2835_v58  ;;  %v2832_v2 = vor.u32 %v3368_v60, %v2829_v61  ;;  %v2847_v4 = vld [vmem:[%s3754_s20 + $0x78] sm:$0xf] }
  0x26   : > { %1181 = vmatpush.bf16.msra.mxu1 %v3449_v18  ;;  %v2840_v3 = vor.u32 %v3369_v62, %v2837_v63  ;;  %v3375_v5 = vld [vmem:[%s3754_s20 + $0x88] sm:$0xf0]  ;;  %v2855_v6 = vld [vmem:[%s3754_s20 + $0x80] sm:$0xf]  ;;  %v3376_v7 = vld [vmem:[%s3754_s20 + $0x90] sm:$0xf0] }
  0x27   : > { %1359 = vmatpush.bf16.msra.mxu3 %v3465_v19  ;;  %v3373_v8 = vld [vmem:[%s3754_s20 + $0x7c] sm:$0xf]  ;;  %v2849_v9 = vld [vmem:[%s3754_s20 + $0x8c] sm:$0xf0]  ;;  %v3374_v10 = vld [vmem:[%s3754_s20 + $0x84] sm:$0xf]  ;;  %v2848_v12 = vor.u32 %v3375_v5, %v2847_v4  ;;  %v2856_v13 = vor.u32 %v3376_v7, %v2855_v6 }
  0x28   : > { %1093 = vmatpush.bf16.msra.mxu0 %v3440_v20  ;;  %v2857_v11 = vld [vmem:[%s3754_s20 + $0x94] sm:$0xf0]  ;;  %v2852_v14 = vor.u32 %v3373_v8, %v2849_v9  ;;  %v2867_v16 = vld [vmem:[%s3754_s20 + $0xa0] sm:$0xf]  ;;  %v3380_v17 = vld [vmem:[%s3754_s20 + $0xb0] sm:$0xf0] }
  0x29   : > { %1271 = vmatpush.bf16.msra.mxu2 %v3456_v21  ;;  %v2860_v15 = vor.u32 %v3374_v10, %v2857_v11  ;;  %v2875_v18 = vld [vmem:[%s3754_s20 + $0xa8] sm:$0xf]  ;;  %v3381_v19 = vld [vmem:[%s3754_s20 + $0xb8] sm:$0xf0]  ;;  %v3378_v20 = vld [vmem:[%s3754_s20 + $0xa4] sm:$0xf] }
  0x2a   : > { %1182 = vmatpush.bf16.msra.mxu1 %v3448_v22  ;;  %v2869_v21 = vld [vmem:[%s3754_s20 + $0xb4] sm:$0xf0]  ;;  %v3379_v22 = vld [vmem:[%s3754_s20 + $0xac] sm:$0xf]  ;;  %v2889_v33 = vld [vmem:[%s3754_s20 + $0xdc] sm:$0xf0] }
  0x2b   : > { %1360 = vmatpush.bf16.msra.mxu3 %v3464_v23  ;;  %v2877_v23 = vld [vmem:[%s3754_s20 + $0xbc] sm:$0xf0]  ;;  %v3383_v32 = vld [vmem:[%s3754_s20 + $0xcc] sm:$0xf]  ;;  %v3384_v34 = vld [vmem:[%s3754_s20 + $0xd4] sm:$0xf] }
  0x2c   : > { %1094 = vmatpush.bf16.msra.mxu0 %v3439_v24  ;;  %v2868_v24 = vor.u32 %v3380_v17, %v2867_v16  ;;  %v2897_v35 = vld [vmem:[%s3754_s20 + $0xe4] sm:$0xf0]  ;;  %v2892_v38 = vor.u32 %v3383_v32, %v2889_v33  ;;  %v3388_v44 = vld [vmem:[%s3754_s20 + $0xf4] sm:$0xf]  ;;  %v3389_v46 = vld [vmem:[%s3754_s20 + $0xfc] sm:$0xf] }
  0x2d   : > { %1272 = vmatpush.bf16.msra.mxu2 %v3455_v25  ;;  %v2876_v25 = vor.u32 %v3381_v19, %v2875_v18  ;;  %v2900_v39 = vor.u32 %v3384_v34, %v2897_v35  ;;  %v2909_v45 = vld [vmem:[%s3754_s20 + $0x104] sm:$0xf0]  ;;  %v2917_v47 = vld [vmem:[%s3754_s20 + $0x10c] sm:$0xf0]  ;;  %v3396_v56 = vld [vmem:[%s3754_s20 + $0x130] sm:$0xf0] }
  0x2e   : > { %1183 = vmatpush.bf16.msra.mxu1 %v3447_v26  ;;  %v2872_v26 = vor.u32 %v3378_v20, %v2869_v21  ;;  %v2912_v50 = vor.u32 %v3388_v44, %v2909_v45  ;;  %v2920_v51 = vor.u32 %v3389_v46, %v2917_v47  ;;  %v3393_v57 = vld [vmem:[%s3754_s20 + $0x11c] sm:$0xf]  ;;  %v2929_v58 = vld [vmem:[%s3754_s20 + $0x12c] sm:$0xf0]  ;;  %v3394_v59 = vld [vmem:[%s3754_s20 + $0x124] sm:$0xf] }
  0x2f   : > { %1361 = vmatpush.bf16.msra.mxu3 %v3463_v27  ;;  %v2880_v27 = vor.u32 %v3379_v22, %v2877_v23  ;;  %v2937_v60 = vld [vmem:[%s3754_s20 + $0x134] sm:$0xf0]  ;;  %v2932_v63 = vor.u32 %v3393_v57, %v2929_v58  ;;  %v2955_v4 = vld [vmem:[%s3754_s20 + $0x148] sm:$0xf]  ;;  %v3401_v5 = vld [vmem:[%s3754_s20 + $0x158] sm:$0xf0] }
  0x30   : > { %1095 = vmatpush.bf16.msra.mxu0 %v3438_v28  ;;  %v2887_v28 = vld [vmem:[%s3754_s20 + $0xc8] sm:$0xf]  ;;  %v3398_v6 = vld [vmem:[%s3754_s20 + $0x144] sm:$0xf]  ;;  %v2949_v7 = vld [vmem:[%s3754_s20 + $0x154] sm:$0xf0]  ;;  %v2956_v11 = vor.u32 %v3401_v5, %v2955_v4 }
  0x31   : > { %1273 = vmatpush.bf16.msra.mxu2 %v3454_v29  ;;  %v3385_v29 = vld [vmem:[%s3754_s20 + $0xd8] sm:$0xf0]  ;;  %v3399_v8 = vld [vmem:[%s3754_s20 + $0x14c] sm:$0xf]  ;;  %v2957_v9 = vld [vmem:[%s3754_s20 + $0x15c] sm:$0xf0] }
  0x32   : > { %1184 = vmatpush.bf16.msra.mxu1 %v3446_v30  ;;  %v2895_v30 = vld [vmem:[%s3754_s20 + $0xd0] sm:$0xf]  ;;  %v2888_v36 = vor.u32 %v3385_v29, %v2887_v28  ;;  %v3406_v29 = vld [vmem:[%s3754_s20 + $0x180] sm:$0xf0]  ;;  %v3404_v32 = vld [vmem:[%s3754_s20 + $0x174] sm:$0xf] }
  0x33   : > { %1362 = vmatpush.bf16.msra.mxu3 %v3462_v31  ;;  %1096 = vmatmul.bf16.vlgmr.msra.gmra.mxu0 %v2788_v40  ;;  %v3386_v31 = vld [vmem:[%s3754_s20 + $0xe0] sm:$0xf0]  ;;  %v2907_v40 = vld [vmem:[%s3754_s20 + $0xf0] sm:$0xf]  ;;  %v2977_v33 = vld [vmem:[%s3754_s20 + $0x184] sm:$0xf0] }
  0x34   : > { %1274 = vmatmul.bf16.vlgmr.msra.gmra.mxu2 %v2796_v41  ;;  %v2896_v37 = vor.u32 %v3386_v31, %v2895_v30  ;;  %v3390_v41 = vld [vmem:[%s3754_s20 + $0x100] sm:$0xf0]  ;;  %v2975_v28 = vld [vmem:[%s3754_s20 + $0x170] sm:$0xf]  ;;  %v3403_v30 = vld [vmem:[%s3754_s20 + $0x16c] sm:$0xf] }
  0x35   : > { %1185 = vmatmul.bf16.vlgmr.msra.gmra.mxu1 %v2792_v42  ;;  %v2915_v42 = vld [vmem:[%s3754_s20 + $0xf8] sm:$0xf]  ;;  %v2908_v48 = vor.u32 %v3390_v41, %v2907_v40  ;;  %v2969_v31 = vld [vmem:[%s3754_s20 + $0x17c] sm:$0xf0]  ;;  %v2980_v41 = vor.u32 %v3404_v32, %v2977_v33  ;;  %v3411_v57 = vld [vmem:[%s3754_s20 + $0x1a8] sm:$0xf0] }
  0x36   : > { %1363 = vmatmul.bf16.vlgmr.msra.gmra.mxu3 %v2800_v43  ;;  %v3391_v43 = vld [vmem:[%s3754_s20 + $0x108] sm:$0xf0]  ;;  %v2972_v40 = vor.u32 %v3403_v30, %v2969_v31  ;;  %v3408_v58 = vld [vmem:[%s3754_s20 + $0x194] sm:$0xf] }
  0x37   : > { %v2916_v49 = vor.u32 %v3391_v43, %v2915_v42 }
  0x43   : > { %1101 = vmatmul.bf16.gmra.mxu0 %v2808_v52  ;;  %v3473_v52 = vld [vmem:[%s4687_s1 + $0x118] sm:$0xff] }
  0x44   : > { %1279 = vmatmul.bf16.gmra.mxu2 %v2816_v53  ;;  %1448 = vmatpush.bf16.msrb.mxu0 %v3473_v52  ;;  %v2927_v53 = vld [vmem:[%s3754_s20 + $0x118] sm:$0xf] }
  0x45   : > { %1190 = vmatmul.bf16.gmra.mxu1 %v2812_v54  ;;  %v3395_v54 = vld [vmem:[%s3754_s20 + $0x128] sm:$0xf0] }
  0x46   : > { %1368 = vmatmul.bf16.gmra.mxu3 %v2820_v55  ;;  %v2935_v55 = vld [vmem:[%s3754_s20 + $0x120] sm:$0xf]  ;;  %v2928_v61 = vor.u32 %v3395_v54, %v2927_v53  ;;  %v2987_v54 = vld [vmem:[%s3754_s20 + $0x190] sm:$0xf] }
  0x47   : > { %v2936_v62 = vor.u32 %v3396_v56, %v2935_v55  ;;  %v3410_v55 = vld [vmem:[%s3754_s20 + $0x1a0] sm:$0xf0]  ;;  %v2995_v56 = vld [vmem:[%s3754_s20 + $0x198] sm:$0xf] }
  0x53   : > { %1106 = vmatmul.bf16.gmra.mxu0 %v2828_v0  ;;  %v2940_v0 = vor.u32 %v3394_v59, %v2937_v60  ;;  %v2989_v59 = vld [vmem:[%s3754_s20 + $0x1a4] sm:$0xf0]  ;;  %v3409_v60 = vld [vmem:[%s3754_s20 + $0x19c] sm:$0xf] }
  0x54   : > { %1284 = vmatmul.bf16.gmra.mxu2 %v2836_v1  ;;  %v3844_v1 = vld [vmem:[%s4688_s2] ss:$0 sm:$0xff]  ;;  %v2992_v5 = vor.u32 %v3408_v58, %v2989_v59 }
  0x55   : > { %1195 = vmatmul.bf16.gmra.mxu1 %v2832_v2  ;;  %v2947_v2 = vld [vmem:[%s3754_s20 + $0x140] sm:$0xf] }
  0x56   : > { %1373 = vmatmul.bf16.gmra.mxu3 %v2840_v3  ;;  %v3400_v3 = vld [vmem:[%s3754_s20 + $0x150] sm:$0xf0]  ;;  %v3037_v58 = vld [vmem:[%s3754_s20 + $0x1fc] sm:$0xf0] }
  0x57   : > { %v2948_v10 = vor.u32 %v3400_v3, %v2947_v2  ;;  %v2988_v2 = vor.u32 %v3410_v55, %v2987_v54  ;;  %v2996_v3 = vor.u32 %v3411_v57, %v2995_v56  ;;  %v3421_v54 = vld [vmem:[%s3754_s20 + $0x1f8] sm:$0xf0]  ;;  %v3418_v55 = vld [vmem:[%s3754_s20 + $0x1e4] sm:$0xf]  ;;  %v3029_v56 = vld [vmem:[%s3754_s20 + $0x1f4] sm:$0xf0] }
  0x58   : > { %v3419_v57 = vld [vmem:[%s3754_s20 + $0x1ec] sm:$0xf] }
  0x63   : > { %1111 = vmatmul.bf16.gmra.mxu0 %v2848_v12 }
  0x64   : > { %1289 = vmatmul.bf16.gmra.mxu2 %v2856_v13  ;;  %v2952_v13 = vor.u32 %v3398_v6, %v2949_v7 }
  0x65   : > { %1200 = vmatmul.bf16.gmra.mxu1 %v2852_v14  ;;  %v2960_v14 = vor.u32 %v3399_v8, %v2957_v9 }
  0x66   : > { %1378 = vmatmul.bf16.gmra.mxu3 %v2860_v15 }
  0x73   : > { %1116 = vmatmul.bf16.gmra.mxu0 %v2868_v24 }
  0x74   : > { %1294 = vmatmul.bf16.gmra.mxu2 %v2876_v25 }
  0x75   : > { %1205 = vmatmul.bf16.gmra.mxu1 %v2872_v26  ;;  %v2967_v26 = vld [vmem:[%s3754_s20 + $0x168] sm:$0xf] }
  0x76   : > { %1383 = vmatmul.bf16.gmra.mxu3 %v2880_v27  ;;  %v3405_v27 = vld [vmem:[%s3754_s20 + $0x178] sm:$0xf0] }
  0x83   : > { %1121 = vmatmul.bf16.gmra.mxu0 %v2888_v36 }
  0x84   : > { %1299 = vmatmul.bf16.gmra.mxu2 %v2896_v37  ;;  %v2968_v37 = vor.u32 %v3405_v27, %v2967_v26  ;;  %v3009_v26 = vld [vmem:[%s3754_s20 + $0x1cc] sm:$0xf0]  ;;  %v3414_v27 = vld [vmem:[%s3754_s20 + $0x1c4] sm:$0xf] }
  0x85   : > { %1210 = vmatmul.bf16.gmra.mxu1 %v2892_v38  ;;  %v2976_v38 = vor.u32 %v3406_v29, %v2975_v28  ;;  %v3017_v28 = vld [vmem:[%s3754_s20 + $0x1d4] sm:$0xf0] }
  0x86   : > { %1388 = vmatmul.bf16.gmra.mxu3 %v2900_v39 }
  0x93   : > { %1126 = vmatmul.bf16.gmra.mxu0 %v2908_v48 }
  0x94   : > { %1304 = vmatmul.bf16.gmra.mxu2 %v2916_v49 }
  0x95   : > { %1215 = vmatmul.bf16.gmra.mxu1 %v2912_v50 }
  0x96   : > { %1393 = vmatmul.bf16.gmra.mxu3 %v2920_v51 }
  0xa3   : > { %1131 = vmatmul.bf16.gmra.mxu0 %v2928_v61  ;;  %v2997_v61 = vld [vmem:[%s3754_s20 + $0x1ac] sm:$0xf0] }
  0xa4   : > { %1309 = vmatmul.bf16.gmra.mxu2 %v2936_v62  ;;  %v3000_v6 = vor.u32 %v3409_v60, %v2997_v61 }
  0xa5   : > { %1220 = vmatmul.bf16.gmra.mxu1 %v2932_v63 }
  0xa6   : > { %1398 = vmatmul.bf16.gmra.mxu3 %v2940_v0 }
  0xb0   : > { %v1097_v12 = vpop.f32.mrf.mxu0 }
  0xb1   : > { %v1098_v15 = vadd.f32 %v3844_v1, %v1097_v12 }
  0xb2   : > { %v1186_v16 = vpop.f32.mrf.mxu1 }
  0xb3   : > { %v1187_v17 = vadd.f32 %v1186_v16, %v1098_v15  ;;  %1136 = vmatmul.bf16.gmra.mxu0 %v2948_v10 }
  0xb4   : > { %1314 = vmatmul.bf16.gmra.mxu2 %v2956_v11  ;;  %v3472_v11 = vld [vmem:[%s4687_s1 + $0x110] sm:$0xff] }
  0xb5   : > { %1225 = vmatmul.bf16.gmra.mxu1 %v2952_v13  ;;  %1449 = vmatpush.bf16.msrb.mxu0 %v3472_v11  ;;  %v3423_v11 = vld [vmem:[%s3754_s20 + $0x20c] sm:$0xf] }
  0xb6   : > { %1403 = vmatmul.bf16.gmra.mxu3 %v2960_v14 }
  0xb7   : > { %v1275_v18 = vpop.f32.mrf.mxu2 }
  0xb8   : > { %v1276_v19 = vadd.f32 %v1275_v18, %v1187_v17  ;;  %v1099_v21 = vpop.f32.mrf.mxu0 }
  0xb9   : > { %v1364_v20 = vpop.f32.mrf.mxu3  ;;  %v1100_v22 = vadd.f32 %v3844_v1, %v1099_v21  ;;  %v3415_v21 = vld [vmem:[%s3754_s20 + $0x1c8] sm:$0xf0] }
  0xba   : > { %v3856_v23 = vadd.f32 %v1364_v20, %v1276_v19  ;;  %v1188_v24 = vpop.f32.mrf.mxu1  ;;  %v3007_v20 = vld [vmem:[%s3754_s20 + $0x1b8] sm:$0xf] }
  0xbb   : > { %v1189_v25 = vadd.f32 %v1188_v24, %v1100_v22  ;;  %v3015_v22 = vld [vmem:[%s3754_s20 + $0x1c0] sm:$0xf]  ;;  %v3416_v24 = vld [vmem:[%s3754_s20 + $0x1d0] sm:$0xf0]  ;;  %v3008_v32 = vor.u32 %v3415_v21, %v3007_v20 }
  0xbc   : > { %v3016_v33 = vor.u32 %v3416_v24, %v3015_v22  ;;  %v3471_v22 = vld [vmem:[%s4687_s1 + $0x108] sm:$0xff]  ;;  %v3067_v24 = vld [vmem:[%s3754_s20 + $0x230] sm:$0xf] }
  0xbd   : > { %1450 = vmatpush.bf16.msrb.mxu0 %v3471_v22  ;;  %v3382_v22 = vld [vmem:[%s3754_s20 + $0xc0] sm:$0xf0] }
  0xbf   : > { %v1277_v34 = vpop.f32.mrf.mxu2 }
  0xc0   : > { %v1278_v35 = vadd.f32 %v1277_v34, %v1189_v25  ;;  %v1102_v39 = vpop.f32.mrf.mxu0  ;;  %v3413_v25 = vld [vmem:[%s3754_s20 + $0x1bc] sm:$0xf] }
  0xc1   : > { %v1366_v36 = vpop.f32.mrf.mxu3  ;;  %v1103_v42 = vadd.f32 %v3844_v1, %v1102_v39 }
  0xc2   : > { %v3867_v43 = vadd.f32 %v1366_v36, %v1278_v35  ;;  %v1191_v44 = vpop.f32.mrf.mxu1  ;;  %v3012_v35 = vor.u32 %v3413_v25, %v3009_v26  ;;  %v3020_v36 = vor.u32 %v3414_v27, %v3017_v28  ;;  %v3430_v25 = vld [vmem:[%s3754_s20 + $0x240] sm:$0xf0]  ;;  %v3075_v26 = vld [vmem:[%s3754_s20 + $0x238] sm:$0xf]  ;;  %v3431_v27 = vld [vmem:[%s3754_s20 + $0x248] sm:$0xf0] }
  0xc3   : > { %v1192_v45 = vadd.f32 %v1191_v44, %v1103_v42  ;;  %1141 = vmatmul.bf16.gmra.mxu0 %v2968_v37  ;;  %v3428_v28 = vld [vmem:[%s3754_s20 + $0x234] sm:$0xf] }
  0xc4   : > { %1319 = vmatmul.bf16.gmra.mxu2 %v2976_v38 }
  0xc5   : > { %1230 = vmatmul.bf16.gmra.mxu1 %v2972_v40 }
  0xc6   : > { %1408 = vmatmul.bf16.gmra.mxu3 %v2980_v41 }
  0xc7   : > { %v1280_v46 = vpop.f32.mrf.mxu2 }
  0xc8   : > { %v1281_v47 = vadd.f32 %v1280_v46, %v1192_v45  ;;  %v1104_v49 = vpop.f32.mrf.mxu0 }
  0xc9   : > { %v1369_v48 = vpop.f32.mrf.mxu3  ;;  %v1105_v50 = vadd.f32 %v3844_v1, %v1104_v49 }
  0xca   : > { %v3870_v51 = vadd.f32 %v1369_v48, %v1281_v47  ;;  %v1193_v52 = vpop.f32.mrf.mxu1 }
  0xcb   : > { %v1194_v53 = vadd.f32 %v1193_v52, %v1105_v50  ;;  %v3027_v50 = vld [vmem:[%s3754_s20 + $0x1e0] sm:$0xf]  ;;  %v3420_v52 = vld [vmem:[%s3754_s20 + $0x1f0] sm:$0xf0] }
  0xcf   : > { %v1282_v62 = vpop.f32.mrf.mxu2 }
  0xd0   : > { %v1283_v63 = vadd.f32 %v1282_v62, %v1194_v53  ;;  %v1107_v4 = vpop.f32.mrf.mxu0  ;;  %v3035_v53 = vld [vmem:[%s3754_s20 + $0x1e8] sm:$0xf]  ;;  %v3028_v62 = vor.u32 %v3420_v52, %v3027_v50 }
  0xd1   : > { %v1371_v0 = vpop.f32.mrf.mxu3  ;;  %v1108_v7 = vadd.f32 %v3844_v1, %v1107_v4 }
  0xd2   : > { %v3881_v8 = vadd.f32 %v1371_v0, %v1283_v63  ;;  %v1196_v9 = vpop.f32.mrf.mxu1  ;;  %v3036_v63 = vor.u32 %v3421_v54, %v3035_v53 }
  0xd3   : > { %v1197_v10 = vadd.f32 %v1196_v9, %v1108_v7  ;;  %1146 = vmatmul.bf16.gmra.mxu0 %v2988_v2  ;;  %v3032_v2 = vor.u32 %v3418_v55, %v3029_v56  ;;  %v3425_v7 = vld [vmem:[%s3754_s20 + $0x218] sm:$0xf0]  ;;  %v3055_v9 = vld [vmem:[%s3754_s20 + $0x210] sm:$0xf] }
  0xd4   : > { %1324 = vmatmul.bf16.gmra.mxu2 %v2996_v3  ;;  %v3040_v3 = vor.u32 %v3419_v57, %v3037_v58  ;;  %v2803_v57 = vld [vmem:[%s3754_s20 + $0x10] sm:$0xf]  ;;  %v3362_v58 = vld [vmem:[%s3754_s20 + $0x20] sm:$0xf0] }
  0xd5   : > { %1235 = vmatmul.bf16.gmra.mxu1 %v2992_v5 }
  0xd6   : > { %1413 = vmatmul.bf16.gmra.mxu3 %v3000_v6  ;;  %v3047_v6 = vld [vmem:[%s3754_s20 + $0x208] sm:$0xf] }
  0xd7   : > { %v1285_v12 = vpop.f32.mrf.mxu2 }
  0xd8   : > { %v1286_v13 = vadd.f32 %v1285_v12, %v1197_v10  ;;  %v1109_v15 = vpop.f32.mrf.mxu0  ;;  %v3426_v10 = vld [vmem:[%s3754_s20 + $0x220] sm:$0xf0]  ;;  %v3049_v12 = vld [vmem:[%s3754_s20 + $0x21c] sm:$0xf0] }
  0xd9   : > { %v1374_v14 = vpop.f32.mrf.mxu3  ;;  %v1110_v16 = vadd.f32 %v3844_v1, %v1109_v15  ;;  %v3048_v15 = vor.u32 %v3425_v7, %v3047_v6  ;;  %v2843_v7 = vld [vmem:[%s3754_s20 + $0x60] sm:$0xf] }
  0xda   : > { %v3887_v17 = vadd.f32 %v1374_v14, %v1286_v13  ;;  %v1198_v18 = vpop.f32.mrf.mxu1  ;;  %v3424_v13 = vld [vmem:[%s3754_s20 + $0x214] sm:$0xf]  ;;  %v3057_v14 = vld [vmem:[%s3754_s20 + $0x224] sm:$0xf0] }
  0xdb   : > { %v1199_v19 = vadd.f32 %v1198_v18, %v1110_v16  ;;  %v3056_v16 = vor.u32 %v3426_v10, %v3055_v9  ;;  %v3060_v20 = vor.u32 %v3424_v13, %v3057_v14  ;;  %v3372_v9 = vld [vmem:[%s3754_s20 + $0x70] sm:$0xf0]  ;;  %v2863_v13 = vld [vmem:[%s3754_s20 + $0x88] sm:$0xf]  ;;  %v3377_v14 = vld [vmem:[%s3754_s20 + $0x98] sm:$0xf0] }
  0xdc   : > { %v2844_v10 = vor.u32 %v3372_v9, %v2843_v7 }
  0xdf   : > { %v1287_v29 = vpop.f32.mrf.mxu2 }
  0xe0   : > { %v1288_v30 = vadd.f32 %v1287_v29, %v1199_v19  ;;  %v1112_v34 = vpop.f32.mrf.mxu0  ;;  %v3052_v19 = vor.u32 %v3423_v11, %v3049_v12  ;;  %v3069_v29 = vld [vmem:[%s3754_s20 + $0x244] sm:$0xf0] }
  0xe1   : > { %v1376_v31 = vpop.f32.mrf.mxu3  ;;  %v1113_v37 = vadd.f32 %v3844_v1, %v1112_v34  ;;  %v3076_v34 = vor.u32 %v3431_v27, %v3075_v26  ;;  %v2903_v27 = vld [vmem:[%s3754_s20 + $0xd8] sm:$0xf] }
  0xe2   : > { %v3898_v38 = vadd.f32 %v1376_v31, %v1288_v30  ;;  %v1201_v39 = vpop.f32.mrf.mxu1  ;;  %v3429_v30 = vld [vmem:[%s3754_s20 + $0x23c] sm:$0xf]  ;;  %v3077_v31 = vld [vmem:[%s3754_s20 + $0x24c] sm:$0xf0] }
  0xe3   : > { %v1202_v40 = vadd.f32 %v1201_v39, %v1113_v37  ;;  %1151 = vmatmul.bf16.gmra.mxu0 %v3008_v32  ;;  %v3470_v32 = vld [vmem:[%s4687_s1 + $0x100] sm:$0xff]  ;;  %v3080_v37 = vor.u32 %v3429_v30, %v3077_v31 }
  0xe4   : > { %1329 = vmatmul.bf16.gmra.mxu2 %v3016_v33  ;;  %v3068_v33 = vor.u32 %v3430_v25, %v3067_v24  ;;  %1451 = vmatpush.bf16.msrb.mxu0 %v3470_v32  ;;  %v2923_v32 = vld [vmem:[%s3754_s20 + $0x100] sm:$0xf] }
  0xe5   : > { %1240 = vmatmul.bf16.gmra.mxu1 %v3012_v35 }
  0xe6   : > { %1418 = vmatmul.bf16.gmra.mxu3 %v3020_v36  ;;  %v3072_v36 = vor.u32 %v3428_v28, %v3069_v29  ;;  %v3387_v28 = vld [vmem:[%s3754_s20 + $0xe8] sm:$0xf0] }
  0xe7   : > { %v1290_v41 = vpop.f32.mrf.mxu2  ;;  %v2904_v29 = vor.u32 %v3387_v28, %v2903_v27 }
  0xe8   : > { %v1291_v42 = vadd.f32 %v1290_v41, %v1202_v40  ;;  %v1114_v45 = vpop.f32.mrf.mxu0  ;;  %v3087_v40 = vld [vmem:[%s3754_s20 + $0x258] sm:$0xf]  ;;  %v3435_v41 = vld [vmem:[%s3754_s20 + $0x268] sm:$0xf0] }
  0xe9   : > { %v1379_v44 = vpop.f32.mrf.mxu3  ;;  %v1115_v46 = vadd.f32 %v3844_v1, %v1114_v45  ;;  %v3433_v45 = vld [vmem:[%s3754_s20 + $0x25c] sm:$0xf]  ;;  %v3088_v50 = vor.u32 %v3435_v41, %v3087_v40  ;;  %v2943_v40 = vld [vmem:[%s3754_s20 + $0x128] sm:$0xf] }
  0xea   : > { %v3901_v47 = vadd.f32 %v1379_v44, %v1291_v42  ;;  %v1203_v48 = vpop.f32.mrf.mxu1  ;;  %v3095_v42 = vld [vmem:[%s3754_s20 + $0x260] sm:$0xf]  ;;  %v3436_v44 = vld [vmem:[%s3754_s20 + $0x270] sm:$0xf0]  ;;  %v3397_v41 = vld [vmem:[%s3754_s20 + $0x138] sm:$0xf0] }
  0xeb   : > { %v1204_v49 = vadd.f32 %v1203_v48, %v1115_v46  ;;  %v3089_v46 = vld [vmem:[%s3754_s20 + $0x26c] sm:$0xf0]  ;;  %v3434_v48 = vld [vmem:[%s3754_s20 + $0x264] sm:$0xf]  ;;  %v3096_v52 = vor.u32 %v3436_v44, %v3095_v42  ;;  %v2944_v42 = vor.u32 %v3397_v41, %v2943_v40 }
  0xec   : > { %v3092_v54 = vor.u32 %v3433_v45, %v3089_v46  ;;  %v2963_v46 = vld [vmem:[%s3754_s20 + $0x150] sm:$0xf] }
  0xef   : > { %v1292_v59 = vpop.f32.mrf.mxu2 }
  0xf0   : > { %v1293_v60 = vadd.f32 %v1292_v59, %v1204_v49  ;;  %v3911_v0 = vpop.f32.mrf.mxu0  ;;  %v3097_v49 = vld [vmem:[%s3754_s20 + $0x274] sm:$0xf0]  ;;  %v2804_v59 = vor.u32 %v3362_v58, %v2803_v57 }
  0xf1   : > { %v1381_v61 = vpop.f32.mrf.mxu3  ;;  %v3100_v55 = vor.u32 %v3434_v48, %v3097_v49  ;;  %v3402_v48 = vld [vmem:[%s3754_s20 + $0x160] sm:$0xf0] }
  0xf2   : > { %v3913_v4 = vadd.f32 %v1381_v61, %v1293_v60  ;;  %v4017_v49 = vpop.f32.mrf.mxu1 }
  0xf3   : > { %1156 = vmatmul.bf16.gmra.mxu0 %v3028_v62  ;;  %v2823_v62 = vld [vmem:[%s3754_s20 + $0x38] sm:$0xf] }
  0xf4   : > { %1334 = vmatmul.bf16.gmra.mxu2 %v3036_v63  ;;  %v3367_v63 = vld [vmem:[%s3754_s20 + $0x48] sm:$0xf0] }
  0xf5   : > { %1245 = vmatmul.bf16.gmra.mxu1 %v3032_v2  ;;  %v2824_v2 = vor.u32 %v3367_v63, %v2823_v62 }
  0xf6   : > { %1423 = vmatmul.bf16.gmra.mxu3 %v3040_v3 }
  0xf8   : > { %v3915_v5 = vpop.f32.mrf.mxu0 }
  0xfa   : > { %v4025_v62 = vpop.f32.mrf.mxu1 }
 0x100   : > { %v3925_v18 = vpop.f32.mrf.mxu0 }
 0x103   : > { %1161 = vmatmul.bf16.gmra.mxu0 %v3048_v15  ;;  %v2864_v15 = vor.u32 %v3377_v14, %v2863_v13  ;;  %v2983_v13 = vld [vmem:[%s3754_s20 + $0x178] sm:$0xf]  ;;  %v3407_v14 = vld [vmem:[%s3754_s20 + $0x188] sm:$0xf0] }
 0x104   : > { %1339 = vmatmul.bf16.gmra.mxu2 %v3056_v16 }
 0x105   : > { %1250 = vmatmul.bf16.gmra.mxu1 %v3052_v19 }
 0x106   : > { %1428 = vmatmul.bf16.gmra.mxu3 %v3060_v20  ;;  %v2883_v20 = vld [vmem:[%s3754_s20 + $0xb0] sm:$0xf] }
 0x107   : > { %v2884_v24 = vor.u32 %v3382_v22, %v2883_v20 }
 0x108   : > { %v3927_v21 = vpop.f32.mrf.mxu0 }
 0x110   : > { %v3943_v35 = vpop.f32.mrf.mxu0 }
 0x113   : > { %1166 = vmatmul.bf16.gmra.mxu0 %v3068_v33  ;;  %v3392_v33 = vld [vmem:[%s3754_s20 + $0x110] sm:$0xf0] }
 0x114   : > { %1344 = vmatmul.bf16.gmra.mxu2 %v3076_v34  ;;  %v2924_v34 = vor.u32 %v3392_v33, %v2923_v32  ;;  %v4035_v32 = vpop.f32.mrf.mxu1 }
 0x115   : > { %1255 = vmatmul.bf16.gmra.mxu1 %v3072_v36 }
 0x116   : > { %1433 = vmatmul.bf16.gmra.mxu3 %v3080_v37 }
 0x118   : > { %v3945_v39 = vpop.f32.mrf.mxu0 }
 0x120   : > { %v3955_v53 = vpop.f32.mrf.mxu0 }
 0x123   : > { %1171 = vmatmul.bf16.gmra.mxu0 %v3088_v50  ;;  %v4019_v50 = vpop.f32.mrf.mxu3 }
 0x124   : > { %1349 = vmatmul.bf16.gmra.mxu2 %v3096_v52  ;;  %v2964_v52 = vor.u32 %v3402_v48, %v2963_v46 }
 0x125   : > { %1260 = vmatmul.bf16.gmra.mxu1 %v3092_v54  ;;  %v4021_v54 = vpop.f32.mrf.mxu2 }
 0x126   : > { %1438 = vmatmul.bf16.gmra.mxu3 %v3100_v55 }
 0x128   : > { %v3957_v56 = vpop.f32.mrf.mxu0 }
 0x12b   : > { %v4027_v63 = vpop.f32.mrf.mxu3 }
 0x12d   : > { %v4030_v9 = vpop.f32.mrf.mxu2 }
 0x130   : > { %v3961_v60 = vpop.f32.mrf.mxu0 }
 0x133   : > { %3249 = vmatmul.msk.bf16.vlgmr.msrb.gmra.mxu0 %vm1039_vm0, %v2804_v59  ;;  %v4037_v33 = vpop.f32.mrf.mxu3 }
 0x138   : > { %v3964_v61 = vpop.f32.mrf.mxu0 }
 0x140   : > { %v3968_v3 = vpop.f32.mrf.mxu0 }
 0x143   : > { %3250 = vmatmul.msk.bf16.gmra.mxu0 %vm1039_vm0, %v2824_v2 }
 0x148   : > { %v3971_v6 = vpop.f32.mrf.mxu0 }
 0x150   : > { %v3975_v11 = vpop.f32.mrf.mxu0 }
 0x153   : > { %3251 = vmatmul.msk.bf16.gmra.mxu0 %vm1039_vm0, %v2844_v10 }
 0x158   : > { %v3978_v12 = vpop.f32.mrf.mxu0 }
 0x160   : > { %v3982_v16 = vpop.f32.mrf.mxu0 }
 0x163   : > { %3252 = vmatmul.msk.bf16.gmra.mxu0 %vm1039_vm0, %v2864_v15 }
 0x168   : > { %v3985_v19 = vpop.f32.mrf.mxu0 }
 0x170   : > { %v3989_v25 = vpop.f32.mrf.mxu0 }
 0x173   : > { %3253 = vmatmul.msk.bf16.gmra.mxu0 %vm1039_vm0, %v2884_v24 }
 0x178   : > { %v3992_v26 = vpop.f32.mrf.mxu0 }
 0x180   : > { %v3996_v30 = vpop.f32.mrf.mxu0 }
 0x183   : > { %3254 = vmatmul.msk.bf16.gmra.mxu0 %vm1039_vm0, %v2904_v29 }
 0x188   : > { %v3999_v31 = vpop.f32.mrf.mxu0 }
 0x190   : > { %v4003_v36 = vpop.f32.mrf.mxu0 }
 0x193   : > { %3255 = vmatmul.msk.bf16.gmra.mxu0 %vm1039_vm0, %v2924_v34  ;;  %v4040_v34 = vpop.f32.mrf.mxu2 }
 0x198   : > { %v4006_v37 = vpop.f32.mrf.mxu0 }
 0x1a0   : > { %v4010_v44 = vpop.f32.mrf.mxu0 }
 0x1a3   : > { %3256 = vmatmul.msk.bf16.gmra.mxu0 %vm1039_vm0, %v2944_v42 }
 0x1a8   : > { %v4013_v45 = vpop.f32.mrf.mxu0 }
 0x1b0   : > { %v1453_v55 = vpop.f32.mrf.mxu0 }
 0x1b1   : > { %v1454_v57 = vadd.f32 %v1453_v55, %v3856_v23  ;;  %v2984_v23 = vor.u32 %v3407_v14, %v2983_v13  ;;  %v3003_v55 = vld [vmem:[%s3754_s20 + $0x1a0] sm:$0xf] }
 0x1b3   : > { %3257 = vmatmul.msk.bf16.gmra.mxu0 %vm1039_vm0, %v2964_v52  ;;  %v1533_v58 = vmax.f32 %v1454_v57, 0.0  ;;  %v4046_v57 = vpop.f32.mrf.mxu1 }
 0x1b5   : > { %v1565_v2 = vmin.f32 %v1533_v58, 6.0  ;;  %v4048_v58 = vpop.f32.mrf.mxu3 }
 0x1b7   : > { %v1597_v15 = vpack.c.bf16 %v1565_v2, %v1565_v2 }
 0x1b8   : > { %v1455_v59 = vpop.f32.mrf.mxu0 }
 0x1b9   : > { %v1456_v7 = vadd.f32 %v1455_v59, %v3867_v43  ;;  %v1632_v27 = vunpack.c.l.b16 %v1597_v15 }
 0x1bb   : > { %v1534_v10 = vmax.f32 %v1456_v7, 0.0  ;;  %v4050_v7 = vpop.f32.mrf.mxu2 }
 0x1bd   : > { %v1566_v20 = vmin.f32 %v1534_v10, 6.0 }
 0x1bf   : > { %v1598_v22 = vpack.c.bf16 %v1566_v20, %v1566_v20 }
 0x1c0   : > { %v1458_v24 = vpop.f32.mrf.mxu0 }
 0x1c1   : > { %v1633_v28 = vunpack.c.l.b16 %v1598_v22  ;;  %v1459_v29 = vadd.f32 %v1458_v24, %v3870_v51  ;;  %v3412_v51 = vld [vmem:[%s3754_s20 + $0x1b0] sm:$0xf0] }
 0x1c2   : > { %v3004_v13 = vor.u32 %v3412_v51, %v3003_v55 }
 0x1c3   : > { %3258 = vmatmul.msk.bf16.gmra.mxu0 %vm1039_vm0, %v2984_v23  ;;  %v1634_v43 = vpack.c.b16 %v1633_v28, %v1632_v27  ;;  %v1535_v40 = vmax.f32 %v1459_v29, 0.0  ;;  %v4055_v27 = vpop.f32.mrf.mxu1  ;;  %v4057_v28 = vpop.f32.mrf.mxu3 }
 0x1c4   : > { %v4059_v29 = vpop.f32.mrf.mxu2 }
 0x1c5   : > { %v1639_v41 = vsel %vm1039_vm0, %v1634_v43, 0  ;;  %v1567_v46 = vmin.f32 %v1535_v40, 6.0 }
 0x1c6   : > { %1648 = vmatpush.bf16.xpose.msrb.mxu1 %v1639_v41 }
 0x1c7   : > { %v1599_v59 = vpack.c.bf16 %v1567_v46, %v1567_v46  ;;  %v3023_v46 = vld [vmem:[%s3754_s20 + $0x1c8] sm:$0xf] }
 0x1c8   : > { %v1460_v42 = vpop.f32.mrf.mxu0 }
 0x1c9   : > { %v1461_v48 = vadd.f32 %v1460_v42, %v3881_v8  ;;  %v1656_v15 = vunpack.c.l.b16 %v1599_v59 }
 0x1cb   : > { %v1536_v52 = vmax.f32 %v1461_v48, 0.0 }
 0x1cd   : > { %v1568_v2 = vmin.f32 %v1536_v52, 6.0 }
 0x1cf   : > { %v1600_v10 = vpack.c.bf16 %v1568_v2, %v1568_v2  ;;  %v4064_v2 = vpop.f32.mrf.mxu1 }
 0x1d0   : > { %v1463_v14 = vpop.f32.mrf.mxu0 }
 0x1d1   : > { %v1657_v20 = vunpack.c.l.b16 %v1600_v10  ;;  %v1464_v8 = vadd.f32 %v1463_v14, %v3887_v17  ;;  %v3417_v17 = vld [vmem:[%s3754_s20 + $0x1d8] sm:$0xf0]  ;;  %v4066_v10 = vpop.f32.mrf.mxu3 }
 0x1d2   : > { %v3024_v51 = vor.u32 %v3417_v17, %v3023_v46 }
 0x1d3   : > { %3259 = vmatmul.msk.bf16.gmra.mxu0 %vm1039_vm0, %v3004_v13  ;;  %v1658_v22 = vpack.c.b16 %v1657_v20, %v1656_v15  ;;  %v1537_v23 = vmax.f32 %v1464_v8, 0.0  ;;  %v4069_v20 = vpop.f32.mrf.mxu2  ;;  %v1118_v8 = vadd.f32 %v3844_v1, %v3911_v0  ;;  %v3043_v0 = vld [vmem:[%s3754_s20 + $0x1f0] sm:$0xf] }
 0x1d5   : > { %v1660_v24 = vsel %vm1039_vm0, %v1658_v22, 0  ;;  %v1569_v40 = vmin.f32 %v1537_v23, 6.0 }
 0x1d6   : > { %1669 = vmatpush.bf16.xpose.msrb.mxu3 %v1660_v24 }
 0x1d7   : > { %v1601_v48 = vpack.c.bf16 %v1569_v40, %v1569_v40 }
 0x1d8   : > { %v1465_v43 = vpop.f32.mrf.mxu0 }
 0x1d9   : > { %v1466_v41 = vadd.f32 %v1465_v43, %v3898_v38  ;;  %v1677_v13 = vunpack.c.l.b16 %v1601_v48  ;;  %v1207_v43 = vadd.f32 %v4017_v49, %v1118_v8  ;;  %v4080_v46 = vpop.f32.mrf.mxu3 }
 0x1db   : > { %v1538_v42 = vmax.f32 %v1466_v41, 0.0  ;;  %v1296_v41 = vadd.f32 %v4021_v54, %v1207_v43  ;;  %v4082_v48 = vpop.f32.mrf.mxu2 }
 0x1dd   : > { %v1570_v52 = vmin.f32 %v1538_v42, 6.0  ;;  %v4078_v42 = vpop.f32.mrf.mxu1  ;;  %v1385_v49 = vadd.f32 %v4019_v50, %v1296_v41 }
 0x1df   : > { %v1602_v55 = vpack.c.bf16 %v1570_v52, %v1570_v52  ;;  %v3422_v52 = vld [vmem:[%s3754_s20 + $0x200] sm:$0xf0] }
 0x1e0   : > { %v1468_v59 = vpop.f32.mrf.mxu0 }
 0x1e1   : > { %v1678_v14 = vunpack.c.l.b16 %v1602_v55  ;;  %v1469_v15 = vadd.f32 %v1468_v59, %v3901_v47  ;;  %v1120_v55 = vadd.f32 %v3844_v1, %v3915_v5  ;;  %v1123_v5 = vadd.f32 %v3844_v1, %v3925_v18  ;;  %v4096_v50 = vpop.f32.mrf.mxu3 }
 0x1e3   : > { %3260 = vmatmul.msk.bf16.gmra.mxu0 %vm1039_vm0, %v3024_v51  ;;  %v1679_v38 = vpack.c.b16 %v1678_v14, %v1677_v13  ;;  %v1539_v22 = vmax.f32 %v1469_v15, 0.0  ;;  %v1209_v54 = vadd.f32 %v4025_v62, %v1120_v55  ;;  %v1212_v41 = vadd.f32 %v4035_v32, %v1123_v5 }
 0x1e5   : > { %v1681_v23 = vsel %vm1039_vm0, %v1679_v38, 0  ;;  %v1571_v40 = vmin.f32 %v1539_v22, 6.0  ;;  %v1298_v22 = vadd.f32 %v4030_v9, %v1209_v54  ;;  %v4104_v9 = vpop.f32.mrf.mxu2 }
 0x1e6   : > { %1690 = vmatpush.bf16.xpose.msra.mxu3 %v1681_v23 }
 0x1e7   : > { %v1603_v51 = vpack.c.bf16 %v1571_v40, %v1571_v40  ;;  %v4102_v40 = vld [vmem:[%s4689_s3] sm:$0xf]  ;;  %v1387_v18 = vadd.f32 %v4027_v63, %v1298_v22 }
 0x1e8   : > { %v1470_v24 = vpop.f32.mrf.mxu0  ;;  %3266 = vmatmul.msk.bf16.vlgmr.msrb.gmra.mxu3 %vm1039_vm0, %v4102_v40  ;;  %3265 = vmatmul.msk.bf16.vlgmr.msrb.gmra.mxu1 %vm1039_vm0, %v4102_v40 }
 0x1e9   : > { %v1471_v47 = vadd.f32 %v1470_v24, %v3913_v4  ;;  %v3044_v4 = vor.u32 %v3422_v52, %v3043_v0  ;;  %v1698_v15 = vunpack.c.l.b16 %v1603_v51  ;;  %v4094_v24 = vpop.f32.mrf.mxu1  ;;  %v1301_v52 = vadd.f32 %v4040_v34, %v1212_v41  ;;  %v3063_v51 = vld [vmem:[%s3754_s20 + $0x218] sm:$0xf]  ;;  %v4120_v54 = vpop.f32.mrf.mxu3 }
 0x1eb   : > { %v1540_v17 = vmax.f32 %v1471_v47, 0.0  ;;  %v1390_v63 = vadd.f32 %v4037_v33, %v1301_v52  ;;  %v1128_v33 = vadd.f32 %v3844_v1, %v3943_v35 }
 0x1ed   : > { %v1572_v59 = vmin.f32 %v1540_v17, 6.0 }
 0x1ef   : > { %v1604_v13 = vpack.c.bf16 %v1572_v59, %v1572_v59  ;;  %v3427_v59 = vld [vmem:[%s3754_s20 + $0x228] sm:$0xf0] }
 0x1f0   : > { %v1473_v14 = vpop.f32.mrf.mxu0  ;;  %v3064_v32 = vor.u32 %v3427_v59, %v3063_v51  ;;  %v3083_v59 = vld [vmem:[%s3754_s20 + $0x240] sm:$0xf] }
 0x1f1   : > { %v1699_v38 = vunpack.c.l.b16 %v1604_v13  ;;  %v1474_v8 = vadd.f32 %v1473_v14, %v1385_v49  ;;  %v1125_v49 = vadd.f32 %v3844_v1, %v3927_v21  ;;  %v4118_v14 = vpop.f32.mrf.mxu1  ;;  %v4138_v35 = vpop.f32.mrf.mxu3 }
 0x1f3   : > { %3261 = vmatmul.msk.bf16.gmra.mxu0 %vm1039_vm0, %v3044_v4  ;;  %v1700_v23 = vpack.c.b16 %v1699_v38, %v1698_v15  ;;  %v1541_v43 = vmax.f32 %v1474_v8, 0.0  ;;  %v4122_v38 = vpop.f32.mrf.mxu2  ;;  %v1214_v34 = vadd.f32 %v4046_v57, %v1125_v49  ;;  %v3432_v49 = vld [vmem:[%s3754_s20 + $0x250] sm:$0xf0] }
 0x1f5   : > { %v1702_v62 = vsel %vm1039_vm0, %v1700_v23, 0  ;;  %v1573_v17 = vmin.f32 %v1541_v43, 6.0  ;;  %v1303_v21 = vadd.f32 %v4050_v7, %v1214_v34 }
 0x1f6   : > { %1711 = vmatpush.bf16.xpose.msra.mxu1 %v1702_v62 }
 0x1f7   : > { %v1605_v13 = vpack.c.bf16 %v1573_v17, %v1573_v17  ;;  %v1392_v57 = vadd.f32 %v4048_v58, %v1303_v21  ;;  %v1130_v58 = vadd.f32 %v3844_v1, %v3945_v39 }
 0x1f8   : > { %v1475_v47 = vpop.f32.mrf.mxu0  ;;  %3267 = vmatmul.msk.bf16.vlgmr.msra.gmra.mxu3 %vm1039_vm0, %v4102_v40 }
 0x1f9   : > { %v1476_v0 = vadd.f32 %v1475_v47, %v1387_v18  ;;  %v1719_v22 = vunpack.c.l.b16 %v1605_v13  ;;  %v1217_v47 = vadd.f32 %v4055_v27, %v1128_v33  ;;  %v4136_v41 = vpop.f32.mrf.mxu1  ;;  %v4154_v39 = vpop.f32.mrf.mxu3 }
 0x1fb   : > { %v1542_v55 = vmax.f32 %v1476_v0, 0.0  ;;  %v4140_v52 = vpop.f32.mrf.mxu2 }
 0x1fd   : > { %v1574_v4 = vmin.f32 %v1542_v55, 6.0  ;;  %3268 = vmatmul.msk.bf16.vlgmr.msra.gmra.mxu1 %vm1039_vm0, %v4102_v40  ;;  %v1306_v55 = vadd.f32 %v4059_v29, %v1217_v47 }
 0x1ff   : > { %v1606_v15 = vpack.c.bf16 %v1574_v4, %v1574_v4  ;;  %v1395_v27 = vadd.f32 %v4057_v28, %v1306_v55  ;;  %v3437_v55 = vld [vmem:[%s3754_s20 + $0x278] sm:$0xf0] }
 0x200   : > { %v1478_v8 = vpop.f32.mrf.mxu0 }
 0x201   : > { %v1720_v23 = vunpack.c.l.b16 %v1606_v15  ;;  %v1479_v5 = vadd.f32 %v1478_v8, %v1390_v63  ;;  %v3084_v15 = vor.u32 %v3432_v49, %v3083_v59  ;;  %v1219_v8 = vadd.f32 %v4064_v2, %v1130_v58  ;;  %v4171_v59 = vpop.f32.mrf.mxu3 }
 0x203   : > { %3262 = vmatmul.msk.bf16.gmra.mxu0 %vm1039_vm0, %v3064_v32  ;;  %v1721_v43 = vpack.c.b16 %v1720_v23, %v1719_v22  ;;  %v1543_v62 = vmax.f32 %v1479_v5, 0.0  ;;  %v1308_v23 = vadd.f32 %v4069_v20, %v1219_v8  ;;  %v4152_v5 = vpop.f32.mrf.mxu1  ;;  %v4157_v28 = vpop.f32.mrf.mxu2 }
 0x205   : > { %v1723_v18 = vsel %vm1039_vm0, %v1721_v43, 0  ;;  %v1575_v17 = vmin.f32 %v1543_v62, 6.0  ;;  %v1133_v43 = vadd.f32 %v3844_v1, %v3955_v53  ;;  %v1397_v20 = vadd.f32 %v4066_v10, %v1308_v23 }
 0x206   : > { %1732 = vmatpush.bf16.xpose.msrb.mxu2 %v1723_v18 }
 0x207   : > { %v1607_v13 = vpack.c.bf16 %v1575_v17, %v1575_v17  ;;  %v1222_v18 = vadd.f32 %v4078_v42, %v1133_v43 }
 0x208   : > { %v1480_v7 = vpop.f32.mrf.mxu0 }
 0x209   : > { %v1481_v0 = vadd.f32 %v1480_v7, %v1392_v57  ;;  %v1740_v34 = vunpack.c.l.b16 %v1607_v13  ;;  %v1311_v47 = vadd.f32 %v4082_v48, %v1222_v18 }
 0x20b   : > { %v1544_v51 = vmax.f32 %v1481_v0, 0.0  ;;  %v3103_v0 = vld [vmem:[%s3754_s20 + $0x268] sm:$0xf]  ;;  %v4169_v53 = vpop.f32.mrf.mxu1  ;;  %v4175_v10 = vpop.f32.mrf.mxu2  ;;  %v1400_v42 = vadd.f32 %v4080_v46, %v1311_v47  ;;  %s2714_s20 = sshll.u32 %s4552_s9, 4  ;;  %s2715_s20 = int_to_ptr.vmem [resolvable:$true] %s2714_s20 }
 0x20c   : > { %v3104_v13 = vor.u32 %v3437_v55, %v3103_v0 }
 0x20d   : > { %v1576_v4 = vmin.f32 %v1544_v51, 6.0  ;;  %3269 = vmatmul.msk.bf16.vlgmr.msrb.gmra.mxu2 %vm1039_vm0, %v4102_v40  ;;  %v1135_v51 = vadd.f32 %v3844_v1, %v3957_v56 }
 0x20f   : > { %v1608_v63 = vpack.c.bf16 %v1576_v4, %v1576_v4 }
 0x210   : > { %v1483_v32 = vpop.f32.mrf.mxu0 }
 0x211   : > { %v1741_v29 = vunpack.c.l.b16 %v1608_v63  ;;  %v1484_v22 = vadd.f32 %v1483_v32, %v1395_v27  ;;  %v1224_v27 = vadd.f32 %v4094_v24, %v1135_v51 }
 0x213   : > { %v1742_v21 = vpack.c.b16 %v1741_v29, %v1740_v34  ;;  %3263 = vmatmul.msk.bf16.gmra.mxu0 %vm1039_vm0, %v3084_v15  ;;  %v1545_v2 = vmax.f32 %v1484_v22, 0.0  ;;  %v1313_v32 = vadd.f32 %v4104_v9, %v1224_v27  ;;  %v1138_v34 = vadd.f32 %v3844_v1, %v3961_v60  ;;  %v1236_v23 = vpop.f32.mrf.mxu1  ;;  %v4187_v24 = vpop.f32.mrf.mxu2 }
 0x214   : > { %v1140_v60 = vadd.f32 %v3844_v1, %v3964_v61 }
 0x215   : > { %v1744_v33 = vsel %vm1039_vm0, %v1742_v21, 0  ;;  %v1577_v57 = vmin.f32 %v1545_v2, 6.0  ;;  %v1402_v46 = vadd.f32 %v4096_v50, %v1313_v32  ;;  %v4185_v21 = vpop.f32.mrf.mxu3  ;;  %v1227_v9 = vadd.f32 %v4118_v14, %v1138_v34 }
 0x216   : > { %1753 = vmatpush.bf16.xpose.msrb.mxu3 %v1744_v33 }
 0x217   : > { %v1609_v49 = vpack.c.bf16 %v1577_v57, %v1577_v57 }
 0x218   : > { %v1485_v62 = vpop.f32.mrf.mxu0 }
 0x219   : > { %v1486_v7 = vadd.f32 %v1485_v62, %v1397_v20  ;;  %v1761_v63 = vunpack.c.l.b16 %v1609_v49  ;;  %v1316_v20 = vadd.f32 %v4122_v38, %v1227_v9 }
 0x21b   : > { %v1546_v17 = vmax.f32 %v1486_v7, 0.0  ;;  %v1405_v50 = vadd.f32 %v4120_v54, %v1316_v20  ;;  %v1238_v14 = vpop.f32.mrf.mxu1  ;;  %v1327_v49 = vpop.f32.mrf.mxu2 }
 0x21d   : > { %v1578_v58 = vmin.f32 %v1546_v17, 6.0  ;;  %3270 = vmatmul.msk.bf16.vlgmr.msrb.gmra.mxu3 %vm1039_vm0, %v4102_v40  ;;  %v1229_v17 = vadd.f32 %v4136_v41, %v1140_v60  ;;  %v4197_v0 = vpop.f32.mrf.mxu3 }
 0x21f   : > { %v1610_v48 = vpack.c.bf16 %v1578_v58, %v1578_v58  ;;  %v1318_v61 = vadd.f32 %v4140_v52, %v1229_v17 }
 0x220   : > { %v1488_v4 = vpop.f32.mrf.mxu0 }
 0x221   : > { %v1762_v56 = vunpack.c.l.b16 %v1610_v48  ;;  %v1489_v15 = vadd.f32 %v1488_v4, %v1400_v42  ;;  %v1143_v42 = vadd.f32 %v3844_v1, %v3968_v3  ;;  %v1145_v3 = vadd.f32 %v3844_v1, %v3971_v6  ;;  %v4218_v1 = vld [vmem:[%s4688_s2] ss:$0 sm:$0xff] }
 0x222   : > { %v1148_v6 = vadd.f32 %v4218_v1, %v3975_v11 }
 0x223   : > { %v1763_v8 = vpack.c.b16 %v1762_v56, %v1761_v63  ;;  %3264 = vmatmul.msk.bf16.gmra.mxu0 %vm1039_vm0, %v3104_v13  ;;  %v1547_v29 = vmax.f32 %v1489_v15, 0.0  ;;  %v1407_v13 = vadd.f32 %v4138_v35, %v1318_v61  ;;  %v1232_v4 = vadd.f32 %v4152_v5, %v1143_v42  ;;  %v1241_v15 = vpop.f32.mrf.mxu1 }
 0x225   : > { %v1765_v22 = vsel %vm1039_vm0, %v1763_v8, 0  ;;  %v1579_v2 = vmin.f32 %v1547_v29, 6.0  ;;  %v1321_v56 = vadd.f32 %v4157_v28, %v1232_v4  ;;  %v4206_v32 = vpop.f32.mrf.mxu3  ;;  %v1330_v8 = vpop.f32.mrf.mxu2 }
 0x226   : > { %1774 = vmatpush.bf16.xpose.msrb.mxu1 %v1765_v22 }
 0x227   : > { %v1611_v18 = vpack.c.bf16 %v1579_v2, %v1579_v2  ;;  %v1410_v35 = vadd.f32 %v4154_v39, %v1321_v56 }
 0x228   : > { %v1490_v43 = vpop.f32.mrf.mxu0 }
 0x229   : > { %v1491_v33 = vadd.f32 %v1490_v43, %v1402_v46  ;;  %v1782_v55 = vunpack.c.l.b16 %v1611_v18  ;;  %v1234_v46 = vadd.f32 %v4169_v53, %v1145_v3 }
 0x22b   : > { %v1548_v62 = vmax.f32 %v1491_v33, 0.0  ;;  %v1323_v2 = vadd.f32 %v4175_v10, %v1234_v46  ;;  %v1243_v20 = vpop.f32.mrf.mxu1  ;;  %v1237_v10 = vadd.f32 %v1236_v23, %v1148_v6 }
 0x22d   : > { %v1580_v57 = vmin.f32 %v1548_v62, 6.0  ;;  %3271 = vmatmul.msk.bf16.vlgmr.msrb.gmra.mxu1 %vm1039_vm0, %v4102_v40  ;;  %v1421_v39 = vpop.f32.mrf.mxu3  ;;  %v1332_v53 = vpop.f32.mrf.mxu2  ;;  %v1412_v18 = vadd.f32 %v4171_v59, %v1323_v2 }
 0x22f   : > { %v1612_v7 = vpack.c.bf16 %v1580_v57, %v1580_v57 }
 0x230   : > { %v1493_v47 = vpop.f32.mrf.mxu0 }
 0x231   : > { %v1783_v38 = vunpack.c.l.b16 %v1612_v7  ;;  %v1494_v51 = vadd.f32 %v1493_v47, %v1405_v50  ;;  %v1326_v47 = vadd.f32 %v4187_v24, %v1237_v10 }
 0x233   : > { %v1784_v58 = vpack.c.b16 %v1783_v38, %v1782_v55  ;;  %v1549_v48 = vmax.f32 %v1494_v51, 0.0  ;;  %v1150_v55 = vadd.f32 %v4218_v1, %v3978_v12  ;;  %v1415_v51 = vadd.f32 %v4185_v21, %v1326_v47  ;;  %v1246_v61 = vpop.f32.mrf.mxu1 }
 0x234   : > { %v1153_v12 = vadd.f32 %v4218_v1, %v3982_v16 }
 0x235   : > { %v1786_v54 = vsel %vm1039_vm0, %v1784_v58, 0  ;;  %v1581_v27 = vmin.f32 %v1549_v48, 6.0  ;;  %v1424_v58 = vpop.f32.mrf.mxu3  ;;  %v1335_v42 = vpop.f32.mrf.mxu2  ;;  %v1239_v48 = vadd.f32 %v1238_v14, %v1150_v55 }
 0x236   : > { %1795 = vmatpush.bf16.xpose.msra.mxu2 %v1786_v54 }
 0x237   : > { %v1613_v34 = vpack.c.bf16 %v1581_v27, %v1581_v27 }
 0x238   : > { %v1495_v41 = vpop.f32.mrf.mxu0 }
 0x239   : > { %v1496_v63 = vadd.f32 %v1495_v41, %v1407_v13  ;;  %v1803_v28 = vunpack.c.l.b16 %v1613_v34  ;;  %v1328_v41 = vadd.f32 %v1327_v49, %v1239_v48  ;;  %v1155_v49 = vadd.f32 %v4218_v1, %v3985_v19 }
 0x23a   : > { %v1158_v19 = vadd.f32 %v4218_v1, %v3989_v25 }
 0x23b   : > { %v1550_v52 = vmax.f32 %v1496_v63, 0.0  ;;  %v1417_v21 = vadd.f32 %v4197_v0, %v1328_v41  ;;  %v1248_v3 = vpop.f32.mrf.mxu1 }
 0x23d   : > { %v1582_v29 = vmin.f32 %v1550_v52, 6.0  ;;  %3272 = vmatmul.msk.bf16.vlgmr.msra.gmra.mxu2 %vm1039_vm0, %v4102_v40  ;;  %v1242_v52 = vadd.f32 %v1241_v15, %v1153_v12  ;;  %v1426_v34 = vpop.f32.mrf.mxu3  ;;  %v1244_v15 = vadd.f32 %v1243_v20, %v1155_v49 }
 0x23f   : > { %v1614_v5 = vpack.c.bf16 %v1582_v29, %v1582_v29  ;;  %v1333_v6 = vadd.f32 %v1332_v53, %v1244_v15  ;;  %v1160_v53 = vadd.f32 %v4218_v1, %v3992_v26  ;;  %v1163_v26 = vadd.f32 %v4218_v1, %v3996_v30 }
 0x240   : > { %v1498_v22 = vpop.f32.mrf.mxu0 }
 0x241   : > { %v1804_v43 = vunpack.c.l.b16 %v1614_v5  ;;  %v1499_v9 = vadd.f32 %v1498_v22, %v1410_v35  ;;  %v1337_v35 = vpop.f32.mrf.mxu2  ;;  %v1331_v5 = vadd.f32 %v1330_v8, %v1242_v52 }
 0x243   : > { %v1805_v33 = vpack.c.b16 %v1804_v43, %v1803_v28  ;;  %v1551_v62 = vmax.f32 %v1499_v9, 0.0  ;;  %v1420_v28 = vadd.f32 %v4206_v32, %v1331_v5 }
 0x245   : > { %v1807_v60 = vsel %vm1039_vm0, %v1805_v33, 0  ;;  %v1583_v50 = vmin.f32 %v1551_v62, 6.0  ;;  %v1251_v62 = vpop.f32.mrf.mxu1  ;;  %v1429_v8 = vpop.f32.mrf.mxu3 }
 0x246   : > { %1816 = vmatpush.bf16.xpose.msra.mxu3 %v1807_v60  ;;  %v1252_v52 = vadd.f32 %v1251_v62, %v1163_v26 }
 0x247   : > { %v1615_v11 = vpack.c.bf16 %v1583_v50, %v1583_v50  ;;  %v1422_v50 = vadd.f32 %v1421_v39, %v1333_v6 }
 0x248   : > { %v1500_v57 = vpop.f32.mrf.mxu0 }
 0x249   : > { %v1501_v7 = vadd.f32 %v1500_v57, %v1412_v18  ;;  %v1824_v54 = vunpack.c.l.b16 %v1615_v11  ;;  %v1340_v18 = vpop.f32.mrf.mxu2 }
 0x24b   : > { %v1552_v17 = vmax.f32 %v1501_v7, 0.0  ;;  %v1247_v7 = vadd.f32 %v1246_v61, %v1158_v19 }
 0x24d   : > { %v1584_v38 = vmin.f32 %v1552_v17, 6.0  ;;  %3273 = vmatmul.msk.bf16.vlgmr.msra.gmra.mxu3 %vm1039_vm0, %v4102_v40  ;;  %v1336_v17 = vadd.f32 %v1335_v42, %v1247_v7  ;;  %v1253_v11 = vpop.f32.mrf.mxu1 }
 0x24f   : > { %v1616_v59 = vpack.c.bf16 %v1584_v38, %v1584_v38  ;;  %v1431_v38 = vpop.f32.mrf.mxu3 }
 0x250   : > { %v1503_v23 = vpop.f32.mrf.mxu0 }
 0x251   : > { %v1825_v13 = vunpack.c.l.b16 %v1616_v59  ;;  %v1504_v24 = vadd.f32 %v1503_v23, %v1415_v51  ;;  %v1342_v25 = vpop.f32.mrf.mxu2  ;;  %v1425_v23 = vadd.f32 %v1424_v58, %v1336_v17  ;;  %v1170_v17 = vadd.f32 %v4218_v1, %v4006_v37 }
 0x253   : > { %v1826_v4 = vpack.c.b16 %v1825_v13, %v1824_v54  ;;  %v1553_v27 = vmax.f32 %v1504_v24, 0.0  ;;  %v1249_v54 = vadd.f32 %v1248_v3, %v1160_v53 }
 0x255   : > { %v1828_v63 = vsel %vm1039_vm0, %v1826_v4, 0  ;;  %v1585_v29 = vmin.f32 %v1553_v27, 6.0  ;;  %v1338_v42 = vadd.f32 %v1337_v35, %v1249_v54  ;;  %v1165_v35 = vadd.f32 %v4218_v1, %v3999_v31 }
 0x256   : > { %1837 = vmatpush.bf16.xpose.msra.mxu1 %v1828_v63  ;;  %v1256_v63 = vpop.f32.mrf.mxu1  ;;  %v1168_v31 = vadd.f32 %v4218_v1, %v4003_v36  ;;  %v1173_v54 = vadd.f32 %v4218_v1, %v4010_v44 }
 0x257   : > { %v1617_v46 = vpack.c.bf16 %v1585_v29, %v1585_v29  ;;  %v1427_v27 = vadd.f32 %v1426_v34, %v1338_v42 }
 0x258   : > { %v1505_v56 = vpop.f32.mrf.mxu0  ;;  %v1257_v19 = vadd.f32 %v1256_v63, %v1168_v31 }
 0x259   : > { %v1506_v14 = vadd.f32 %v1505_v56, %v1417_v21  ;;  %v1845_v9 = vunpack.c.l.b16 %v1617_v46  ;;  %v1434_v21 = vpop.f32.mrf.mxu3  ;;  %v1345_v56 = vpop.f32.mrf.mxu2 }
 0x25b   : > { %v1554_v22 = vmax.f32 %v1506_v14, 0.0  ;;  %v1341_v14 = vadd.f32 %v1340_v18, %v1252_v52 }
 0x25d   : > { %v1586_v16 = vmin.f32 %v1554_v22, 6.0  ;;  %3274 = vmatmul.msk.bf16.vlgmr.msra.gmra.mxu1 %vm1039_vm0, %v4102_v40  ;;  %v1430_v30 = vadd.f32 %v1429_v8, %v1341_v14 }
 0x25f   : > { %v1618_v0 = vpack.c.bf16 %v1586_v16, %v1586_v16  ;;  %v1254_v16 = vadd.f32 %v1253_v11, %v1165_v35 }
 0x260   : > { %v1508_v43 = vpop.f32.mrf.mxu0 }
 0x261   : > { %v1846_v2 = vunpack.c.l.b16 %v1618_v0  ;;  %v1509_v33 = vadd.f32 %v1508_v43, %v1420_v28  ;;  %v1258_v28 = vpop.f32.mrf.mxu1  ;;  %v1436_v0 = vpop.f32.mrf.mxu3 }
 0x263   : > { %v1847_v60 = vpack.c.b16 %v1846_v2, %v1845_v9  ;;  %v1555_v57 = vmax.f32 %v1509_v33, 0.0  ;;  %v1347_v2 = vpop.f32.mrf.mxu2  ;;  %v1343_v33 = vadd.f32 %v1342_v25, %v1254_v16 }
 0x265   : > { %v1849_v10 = vsel %vm1039_vm0, %v1847_v60, 0  ;;  %v1587_v47 = vmin.f32 %v1555_v57, 6.0  ;;  %v1432_v18 = vadd.f32 %v1431_v38, %v1343_v33 }
 0x266   : > { %1858 = vmatpush.bf16.xpose.msrb.mxu2 %v1849_v10 }
 0x267   : > { %v1619_v51 = vpack.c.bf16 %v1587_v47, %v1587_v47 }
 0x268   : > { %v1510_v32 = vpop.f32.mrf.mxu0 }
 0x269   : > { %v1511_v20 = vadd.f32 %v1510_v32, %v1422_v50  ;;  %v1866_v61 = vunpack.c.l.b16 %v1619_v51  ;;  %v1346_v50 = vadd.f32 %v1345_v56, %v1257_v19  ;;  %v1261_v32 = vpop.f32.mrf.mxu1  ;;  %v1439_v7 = vpop.f32.mrf.mxu3  ;;  %v1259_v51 = vadd.f32 %v1258_v28, %v1170_v17 }
 0x26a   : > { %v1175_v56 = vadd.f32 %v4218_v1, %v4013_v45 }
 0x26b   : > { %v1556_v55 = vmax.f32 %v1511_v20, 0.0  ;;  %v1350_v20 = vpop.f32.mrf.mxu2  ;;  %v1435_v36 = vadd.f32 %v1434_v21, %v1346_v50 }
 0x26d   : > { %v1588_v59 = vmin.f32 %v1556_v55, 6.0  ;;  %3275 = vmatmul.msk.bf16.vlgmr.msrb.gmra.mxu2 %vm1039_vm0, %v4102_v40 }
 0x26f   : > { %v1620_v48 = vpack.c.bf16 %v1588_v59, %v1588_v59 }
 0x270   : > { %v1513_v39 = vpop.f32.mrf.mxu0 }
 0x271   : > { %v1867_v13 = vunpack.c.l.b16 %v1620_v48  ;;  %v1514_v24 = vadd.f32 %v1513_v39, %v1425_v23  ;;  %v1348_v48 = vadd.f32 %v1347_v2, %v1259_v51 }
 0x273   : > { %v1868_v41 = vpack.c.b16 %v1867_v13, %v1866_v61  ;;  %v1557_v4 = vmax.f32 %v1514_v24, 0.0  ;;  %v1263_v61 = vpop.f32.mrf.mxu1  ;;  %v1441_v13 = vpop.f32.mrf.mxu3 }
 0x274   : > { %v1352_v42 = vpop.f32.mrf.mxu2 }
 0x275   : > { %v1870_v12 = vsel %vm1039_vm0, %v1868_v41, 0  ;;  %v1589_v29 = vmin.f32 %v1557_v4, 6.0  ;;  %v1437_v41 = vadd.f32 %v1436_v0, %v1348_v48  ;;  %v1262_v4 = vadd.f32 %v1261_v32, %v1173_v54 }
 0x276   : > { %1879 = vmatpush.bf16.xpose.msrb.mxu3 %v1870_v12 }
 0x277   : > { %v1621_v22 = vpack.c.bf16 %v1589_v29, %v1589_v29  ;;  %v1351_v63 = vadd.f32 %v1350_v20, %v1262_v4 }
 0x278   : > { %v1515_v58 = vpop.f32.mrf.mxu0 }
 0x279   : > { %v1516_v3 = vadd.f32 %v1515_v58, %v1427_v27  ;;  %v1887_v43 = vunpack.c.l.b16 %v1621_v22  ;;  %v1440_v14 = vadd.f32 %v1439_v7, %v1351_v63  ;;  %v1264_v22 = vadd.f32 %v1263_v61, %v1175_v56 }
 0x27b   : > { %v1558_v5 = vmax.f32 %v1516_v3, 0.0  ;;  %v1671_v44 = vpop.f32.mrf.mxu3  ;;  %v1650_v29 = vpop.f32.mrf.mxu1 }
 0x27d   : > { %v1590_v49 = vmin.f32 %v1558_v5, 6.0  ;;  %3276 = vmatmul.msk.bf16.vlgmr.msrb.gmra.mxu3 %vm1039_vm0, %v4102_v40 }
 0x27f   : > { %v1622_v46 = vpack.c.bf16 %v1590_v49, %v1590_v49 }
 0x280   : > { %v1518_v34 = vpop.f32.mrf.mxu0 }
 0x281   : > { %v1888_v15 = vunpack.c.l.b16 %v1622_v46  ;;  %v1519_v9 = vadd.f32 %v1518_v34, %v1430_v30  ;;  %v1353_v34 = vadd.f32 %v1352_v42, %v1264_v22 }
 0x283   : > { %v1889_v6 = vpack.c.b16 %v1888_v15, %v1887_v43  ;;  %v1559_v62 = vmax.f32 %v1519_v9, 0.0  ;;  %v1673_v1 = vpop.f32.mrf.mxu3  ;;  %v1652_v0 = vpop.f32.mrf.mxu1  ;;  %v1442_v15 = vadd.f32 %v1441_v13, %v1353_v34 }
 0x285   : > { %v1891_v60 = vsel %vm1039_vm0, %v1889_v6, 0  ;;  %v1591_v57 = vmin.f32 %v1559_v62, 6.0 }
 0x286   : > { %1900 = vmatpush.bf16.xpose.msrb.mxu1 %v1891_v60 }
 0x287   : > { %v1623_v55 = vpack.c.bf16 %v1591_v57, %v1591_v57 }
 0x288   : > { %v1520_v8 = vpop.f32.mrf.mxu0 }
 0x289   : > { %v1521_v10 = vadd.f32 %v1520_v8, %v1432_v18  ;;  %v1908_v59 = vunpack.c.l.b16 %v1623_v55  ;;  %v1975_v55 = vpack.c.bf16 %v1650_v29, %v1650_v29 }
 0x28b   : > { %v1560_v47 = vmax.f32 %v1521_v10, 0.0  ;;  %v1692_v60 = vpop.f32.mrf.mxu3  ;;  %v1713_v18 = vpop.f32.mrf.mxu1 }
 0x28c   : > { %v1978_v51 = vpack.c.bf16 %v1713_v18, %v1713_v18 }
 0x28d   : > { %v1592_v53 = vmin.f32 %v1560_v47, 6.0  ;;  %3277 = vmatmul.msk.bf16.vlgmr.msrb.gmra.mxu1 %vm1039_vm0, %v4102_v40 }
 0x28e   : > { %v4279_v13 = vunpack.c.l.b16 %v1978_v51 }
 0x28f   : > { %v1624_v11 = vpack.c.bf16 %v1592_v53, %v1592_v53  ;;  %v1976_v53 = vpack.c.bf16 %v1671_v44, %v1671_v44 }
 0x290   : > { %v1523_v38 = vpop.f32.mrf.mxu0  ;;  %v1734_v3 = vpop.f32.mrf.mxu2 }
 0x291   : > { %v1909_v25 = vunpack.c.l.b16 %v1624_v11  ;;  %v1524_v23 = vadd.f32 %v1523_v38, %v1435_v36  ;;  %v1977_v36 = vpack.c.bf16 %v1692_v60, %v1692_v60  ;;  %v4275_v54 = vunpack.c.l.b16 %v1976_v53 }
 0x293   : > { %v1910_v39 = vpack.c.b16 %v1909_v25, %v1908_v59  ;;  %v1561_v37 = vmax.f32 %v1524_v23, 0.0  ;;  %v1694_v32 = vpop.f32.mrf.mxu3  ;;  %v1715_v7 = vpop.f32.mrf.mxu1  ;;  %v4273_v59 = vunpack.c.l.b16 %v1975_v55  ;;  %v1979_v25 = vpack.c.bf16 %v1734_v3, %v1734_v3 }
 0x294   : > { %v4277_v61 = vunpack.c.l.b16 %v1977_v36  ;;  %v2033_v4 = vrot.slane %v4275_v54, 7 }
 0x295   : > { %v1912_v24 = vsel %vm1039_vm0, %v1910_v39, 0  ;;  %v1593_v12 = vmin.f32 %v1561_v37, 6.0  ;;  %v4281_v37 = vunpack.c.l.b16 %v1979_v25 }
 0x296   : > { %1921 = vmatpush.bf16.xpose.msra.mxu2 %v1912_v24  ;;  %v2035_v56 = vsel %vm2034_vm1, %v2033_v4, %v4273_v59 }
 0x297   : > { %v1625_v58 = vpack.c.bf16 %v1593_v12, %v1593_v12  ;;  %v2136_v12 = vrot.slane %v4277_v61, 7  ;;  %v2042_v3 = vrot.slane %v4281_v37, 4 }
 0x298   : > { %v1525_v26 = vpop.f32.mrf.mxu0  ;;  %v1736_v43 = vpop.f32.mrf.mxu2 }
 0x299   : > { %v1526_v27 = vadd.f32 %v1525_v26, %v1437_v41  ;;  %v1929_v49 = vunpack.c.l.b16 %v1625_v58  ;;  %v2134_v41 = vrot.slane %v4273_v59, 1  ;;  %v2039_v58 = vrot.slane %v4279_v13, 5 }
 0x29b   : > { %v1562_v21 = vmax.f32 %v1526_v27, 0.0  ;;  %v2036_v27 = vrot.slane %v4277_v61, 6  ;;  %v2135_v63 = vsel %vm2034_vm1, %v4275_v54, %v2134_v41  ;;  %v2380_v41 = vrot.slane %v4277_v61, 2 }
 0x29d   : > { %v1594_v52 = vmin.f32 %v1562_v21, 6.0  ;;  %3278 = vmatmul.msk.bf16.vlgmr.msra.gmra.mxu2 %vm1039_vm0, %v4102_v40  ;;  %v2138_v21 = vrot.slane %v4279_v13, 6  ;;  %v2038_v29 = vsel %vm2037_vm2, %v2036_v27, %v2035_v56  ;;  %v2382_v27 = vrot.slane %v4279_v13, 1 }
 0x29f   : > { %v1626_v5 = vpack.c.bf16 %v1594_v52, %v1594_v52  ;;  %v2137_v52 = vsel %vm2037_vm2, %v2136_v12, %v2135_v63 }
 0x2a0   : > { %v1528_v35 = vpop.f32.mrf.mxu0  ;;  %v1755_v47 = vpop.f32.mrf.mxu3 }
 0x2a1   : > { %v1930_v30 = vunpack.c.l.b16 %v1626_v5  ;;  %v1529_v46 = vadd.f32 %v1528_v35, %v1440_v14  ;;  %v1980_v23 = vpack.c.bf16 %v1755_v47, %v1755_v47  ;;  %v2139_v14 = vsel %vm2040_vm3, %v2138_v21, %v2137_v52 }
 0x2a2   : > { %v2041_v5 = vsel %vm2040_vm3, %v2039_v58, %v2038_v29  ;;  %v2299_v47 = vrot.slane %v4277_v61, 1 }
 0x2a3   : > { %v1931_v16 = vpack.c.b16 %v1930_v30, %v1929_v49  ;;  %v1563_v28 = vmax.f32 %v1529_v46, 0.0  ;;  %v4283_v24 = vunpack.c.l.b16 %v1980_v23  ;;  %v2044_v22 = vsel %vm2043_vm4, %v2042_v3, %v2041_v5 }
 0x2a4   : > { %v2140_v30 = vrot.slane %v4281_v37, 5  ;;  %v2377_v23 = vrot.slane %v4273_v59, 4 }
 0x2a5   : > { %v1933_v45 = vsel %vm1039_vm0, %v1931_v16, 0  ;;  %v1595_v2 = vmin.f32 %v1563_v28, 6.0  ;;  %v2045_v35 = vrot.slane %v4283_v24, 3  ;;  %v2223_v60 = vrot.slane %v4283_v24, 5 }
 0x2a6   : > { %1942 = vmatpush.bf16.xpose.msra.mxu3 %v1933_v45  ;;  %v2141_v28 = vsel %vm2043_vm4, %v2140_v30, %v2139_v14  ;;  %v2142_v45 = vrot.slane %v4283_v24, 4  ;;  %v2304_v36 = vrot.slane %v4283_v24, 6  ;;  %v2385_v56 = vrot.slane %v4283_v24, 7 }
 0x2a7   : > { %v1627_v31 = vpack.c.bf16 %v1595_v2, %v1595_v2  ;;  %v2047_v46 = vsel %vm2046_vm5, %v2045_v35, %v2044_v22  ;;  %v2539_v14 = vrot.slane %v4273_v59, 6  ;;  %v2540_v22 = vrot.slane %v4275_v54, 5 }
 0x2a8   : > { %v1530_v9 = vpop.f32.mrf.mxu0  ;;  %v1757_v11 = vpop.f32.mrf.mxu3  ;;  %v2143_v2 = vsel %vm2046_vm5, %v2142_v45, %v2141_v28 }
 0x2a9   : > { %v1531_v33 = vadd.f32 %v1530_v9, %v1442_v15  ;;  %v1950_v19 = vunpack.c.l.b16 %v1627_v31  ;;  %v2215_v15 = vrot.slane %v4273_v59, 2  ;;  %v2216_v9 = vrot.slane %v4275_v54, 1 }
 0x2aa   : > { %v1776_v20 = vpop.f32.mrf.mxu1 }
 0x2ab   : > { %v1564_v6 = vmax.f32 %v1531_v33, 0.0  ;;  %v1981_v48 = vpack.c.bf16 %v1776_v20, %v1776_v20  ;;  %v2219_v33 = vrot.slane %v4279_v13, 7  ;;  %v2302_v20 = vrot.slane %v4281_v37, 7 }
 0x2ad   : > { %v1596_v62 = vmin.f32 %v1564_v6, 6.0  ;;  %3279 = vmatmul.msk.bf16.vlgmr.msra.gmra.mxu3 %vm1039_vm0, %v4102_v40  ;;  %v4285_v42 = vunpack.c.l.b16 %v1981_v48  ;;  %v2221_v6 = vrot.slane %v4281_v37, 6 }
 0x2af   : > { %v1628_v8 = vpack.c.bf16 %v1596_v62, %v1596_v62  ;;  %v2048_v49 = vrot.slane %v4285_v42, 2  ;;  %v2144_v1 = vrot.slane %v4285_v42, 3  ;;  %v2217_v62 = vsel %vm2034_vm1, %v2216_v9, %v2215_v15 }
 0x2b0   : > { %v2225_v18 = vrot.slane %v4285_v42, 4  ;;  %v2306_v11 = vrot.slane %v4285_v42, 5  ;;  %v2387_v58 = vrot.slane %v4285_v42, 6  ;;  %v2458_v15 = vrot.slane %v4273_v59, 5 }
 0x2b1   : > { %v1951_v57 = vunpack.c.l.b16 %v1628_v8  ;;  %v2050_v16 = vsel %vm2049_vm6, %v2048_v49, %v2047_v46  ;;  %v2145_v31 = vsel %vm2049_vm6, %v2144_v1, %v2143_v2  ;;  %v2542_v49 = vrot.slane %v4277_v61, 4 }
 0x2b2   : > { %v1778_v38 = vpop.f32.mrf.mxu1  ;;  %v2544_v46 = vrot.slane %v4279_v13, 3  ;;  %v2541_v1 = vsel %vm2034_vm1, %v2540_v22, %v2539_v14 }
 0x2b3   : > { %v1952_v10 = vpack.c.b16 %v1951_v57, %v1950_v19  ;;  %v2218_v57 = vsel %vm2037_vm2, %v4277_v61, %v2217_v62  ;;  %v2543_v2 = vsel %vm2037_vm2, %v2542_v49, %v2541_v1 }
 0x2b4   : > { %v2220_v32 = vsel %vm2040_vm3, %v2219_v33, %v2218_v57  ;;  %v2459_v33 = vrot.slane %v4275_v54, 4  ;;  %v2545_v62 = vsel %vm2040_vm3, %v2544_v46, %v2543_v2 }
 0x2b5   : > { %v1954_v50 = vsel %vm1039_vm0, %v1952_v10, 0  ;;  %v2296_v10 = vrot.slane %v4273_v59, 3  ;;  %v2222_v55 = vsel %vm2043_vm4, %v2221_v6, %v2220_v32  ;;  %v2461_v6 = vrot.slane %v4277_v61, 3 }
 0x2b6   : > { %1963 = vmatpush.bf16.xpose.msra.mxu1 %v1954_v50  ;;  %v2297_v50 = vrot.slane %v4275_v54, 2  ;;  %v2224_v38 = vsel %vm2046_vm5, %v2223_v60, %v2222_v55  ;;  %v2463_v60 = vrot.slane %v4279_v13, 2  ;;  %v2460_v57 = vsel %vm2034_vm1, %v2459_v33, %v2458_v15 }
 0x2b7   : > { %v2226_v48 = vsel %vm2049_vm6, %v2225_v18, %v2224_v38  ;;  %v2465_v18 = vrot.slane %v4281_v37, 1 }
 0x2b8   : > { %v2298_v53 = vsel %vm2034_vm1, %v2297_v50, %v2296_v10  ;;  %v2468_v10 = vrot.slane %v4285_v42, 7 }
 0x2b9   : > { %v2300_v51 = vsel %vm2037_vm2, %v2299_v47, %v2298_v53  ;;  %v2620_v47 = vrot.slane %v4273_v59, 7  ;;  %v2627_v59 = vrot.slane %v4281_v37, 3 }
 0x2bd   : > { %3280 = vmatmul.msk.bf16.vlgmr.msra.gmra.mxu1 %vm1039_vm0, %v4102_v40 }
 0x2c0   : > { %v1797_v17 = vpop.f32.mrf.mxu2 }
 0x2c1   : > { %v1982_v40 = vpack.c.bf16 %v1797_v17, %v1797_v17 }
 0x2c3   : > { %v4288_v26 = vunpack.c.l.b16 %v1982_v40  ;;  %v2378_v40 = vrot.slane %v4275_v54, 3 }
 0x2c5   : > { %v2051_v34 = vrot.slane %v4288_v26, 1  ;;  %v2146_v43 = vrot.slane %v4288_v26, 2  ;;  %v2227_v7 = vrot.slane %v4288_v26, 3  ;;  %v2308_v25 = vrot.slane %v4288_v26, 4 }
 0x2c6   : > { %v2379_v21 = vsel %vm2034_vm1, %v2378_v40, %v2377_v23  ;;  %v2389_v3 = vrot.slane %v4288_v26, 5  ;;  %v2470_v50 = vrot.slane %v4288_v26, 6 }
 0x2c7   : > { %v4317_v0 = vsel %vm2052_vm7, %v2051_v34, %v2050_v16  ;;  %v4330_v19 = vsel %vm2052_vm7, %v2146_v43, %v2145_v31  ;;  %v4356_v4 = vsel %vm2052_vm7, %v2227_v7, %v2226_v48  ;;  %v2381_v29 = vsel %vm2037_vm2, %v2380_v41, %v2379_v21 }
 0x2c8   : > { %v1799_v39 = vpop.f32.mrf.mxu2  ;;  %v2383_v35 = vsel %vm2040_vm3, %v2382_v27, %v2381_v29  ;;  %v2546_v34 = vrot.slane %v4281_v37, 2  ;;  %v2548_v16 = vrot.slane %v4283_v24, 1  ;;  %v2551_v43 = vrot.slane %v4288_v26, 7 }
 0x2c9   : > { %v2301_v39 = vsel %vm2040_vm3, %v4279_v13, %v2300_v51  ;;  %v2384_v30 = vsel %vm2043_vm4, %v4281_v37, %v2383_v35  ;;  %v2462_v7 = vsel %vm2037_vm2, %v2461_v6, %v2460_v57  ;;  %v2629_v48 = vrot.slane %v4283_v24, 2 }
 0x2ca   : > { %v2303_v12 = vsel %vm2043_vm4, %v2302_v20, %v2301_v39  ;;  %v2386_v45 = vsel %vm2046_vm5, %v2385_v56, %v2384_v30  ;;  %v2621_v20 = vrot.slane %v4275_v54, 6  ;;  %v2464_v53 = vsel %vm2040_vm3, %v2463_v60, %v2462_v7 }
 0x2cb   : > { %v2305_v63 = vsel %vm2046_vm5, %v2304_v36, %v2303_v12  ;;  %v2388_v9 = vsel %vm2049_vm6, %v2387_v58, %v2386_v45  ;;  %v2623_v36 = vrot.slane %v4277_v61, 5  ;;  %v2466_v51 = vsel %vm2043_vm4, %v2465_v18, %v2464_v53 }
 0x2cc   : > { %v2307_v52 = vsel %vm2049_vm6, %v2306_v11, %v2305_v63  ;;  %v4388_v31 = vsel %vm2052_vm7, %v2389_v3, %v2388_v9  ;;  %v2625_v11 = vrot.slane %v4279_v13, 4  ;;  %v2467_v54 = vsel %vm2046_vm5, %v4283_v24, %v2466_v51 }
 0x2cd   : > { %v4369_v5 = vsel %vm2052_vm7, %v2308_v25, %v2307_v52  ;;  %v2622_v25 = vsel %vm2034_vm1, %v2621_v20, %v2620_v47  ;;  %v2631_v61 = vrot.slane %v4285_v42, 1  ;;  %v2469_v13 = vsel %vm2049_vm6, %v2468_v10, %v2467_v54 }
 0x2ce   : > { %v2624_v23 = vsel %vm2037_vm2, %v2623_v36, %v2622_v25  ;;  %v4420_v40 = vsel %vm2052_vm7, %v2470_v50, %v2469_v13 }
 0x2cf   : > { %v2626_v39 = vsel %vm2040_vm3, %v2625_v11, %v2624_v23 }
 0x2d0   : > { %v4300_v44 = vpop.f32.mrf.mxu3  ;;  %v2628_v41 = vsel %vm2043_vm4, %v2627_v59, %v2626_v39 }
 0x2d1   : > { %v2630_v37 = vsel %vm2046_vm5, %v2629_v48, %v2628_v41  ;;  %v1983_v63 = vpack.c.bf16 %v4300_v44, %v4300_v44 }
 0x2d2   : > { %v2632_v12 = vsel %vm2049_vm6, %v2631_v61, %v2630_v37 }
 0x2d3   : > { %v4427_v27 = vsel %vm2052_vm7, %v4288_v26, %v2632_v12  ;;  %v2025_v52 = vunpack.c.l.b16 %v1983_v63 }
 0x2d5   : > { %v2148_v35 = vrot.slane %v2025_v52, 1  ;;  %v2229_v26 = vrot.slane %v2025_v52, 2  ;;  %v2391_v9 = vrot.slane %v2025_v52, 4  ;;  %v2472_v50 = vrot.slane %v2025_v52, 5 }
 0x2d6   : > { %v2634_v54 = vrot.slane %v2025_v52, 7 }
 0x2d8   : > { %v1820_v8 = vpop.f32.mrf.mxu3 }
 0x2d9   : > { %v2547_v8 = vsel %vm2043_vm4, %v2546_v34, %v2545_v62  ;;  %v2553_v62 = vrot.slane %v2025_v52, 6 }
 0x2da   : > { %v4340_v17 = vpop.f32.mrf.mxu1  ;;  %v2549_v32 = vsel %vm2046_vm5, %v2548_v16, %v2547_v8 }
 0x2db   : > { %v2550_v55 = vsel %vm2049_vm6, %v4285_v42, %v2549_v32  ;;  %v1984_v42 = vpack.c.bf16 %v4340_v17, %v4340_v17 }
 0x2dc   : > { %v4407_v38 = vsel %vm2052_vm7, %v2551_v43, %v2550_v55 }
 0x2dd   : > { %v2026_v56 = vunpack.c.l.b16 %v1984_v42 }
 0x2df   : > { %v2054_v3 = vrot.slane %v2026_v56, 7  ;;  %v2230_v30 = vrot.slane %v2026_v56, 1  ;;  %v2149_v17 = vsel %vm2034_vm1, %v2026_v56, %v2148_v35  ;;  %v2311_v45 = vrot.slane %v2026_v56, 2 }
 0x2e0   : > { %v2392_v33 = vrot.slane %v2026_v56, 3  ;;  %v2554_v18 = vrot.slane %v2026_v56, 5  ;;  %v2473_v32 = vrot.slane %v2026_v56, 4  ;;  %v2635_v23 = vrot.slane %v2026_v56, 6 }
 0x2e1   : > { %v2055_v22 = vsel %vm2034_vm1, %v2054_v3, %v2025_v52  ;;  %v2231_v16 = vsel %vm2034_vm1, %v2230_v30, %v2229_v26 }
 0x2e2   : > { %v1841_v28 = vpop.f32.mrf.mxu1  ;;  %v2393_v10 = vsel %vm2034_vm1, %v2392_v33, %v2391_v9  ;;  %v2555_v20 = vsel %vm2034_vm1, %v2554_v18, %v2553_v62  ;;  %v2474_v51 = vsel %vm2034_vm1, %v2473_v32, %v2472_v50  ;;  %v2636_v37 = vsel %vm2034_vm1, %v2635_v23, %v2634_v54 }
 0x2e3   : > { %v2310_v28 = vrot.slane %v2025_v52, 3 }
 0x2e5   : > { %v2312_v2 = vsel %vm2034_vm1, %v2311_v45, %v2310_v28 }
 0x2f0   : > { %v1860_v24 = vpop.f32.mrf.mxu2 }
 0x2f1   : > { %v1985_v21 = vpack.c.bf16 %v1860_v24, %v1860_v24 }
 0x2f3   : > { %v2027_v29 = vunpack.c.l.b16 %v1985_v21 }
 0x2f5   : > { %v2056_v14 = vrot.slane %v2027_v29, 6  ;;  %v2150_v49 = vrot.slane %v2027_v29, 7  ;;  %v4443_v43 = vsel %vm2037_vm2, %v2027_v29, %v2231_v16  ;;  %v2313_v15 = vrot.slane %v2027_v29, 1 }
 0x2f6   : > { %v2394_v6 = vrot.slane %v2027_v29, 2  ;;  %v2556_v8 = vrot.slane %v2027_v29, 4  ;;  %v2475_v7 = vrot.slane %v2027_v29, 3  ;;  %v2637_v48 = vrot.slane %v2027_v29, 5 }
 0x2f7   : > { %v4435_v46 = vsel %vm2037_vm2, %v2056_v14, %v2055_v22  ;;  %v4439_v44 = vsel %vm2037_vm2, %v2150_v49, %v2149_v17  ;;  %v2314_v60 = vsel %vm2037_vm2, %v2313_v15, %v2312_v2  ;;  %v4464_v22 = vld [vmem:[%s4691_s5] sm:$0xff] }
 0x2f8   : > { %v1862_v58 = vpop.f32.mrf.mxu2  ;;  %v2395_v47 = vsel %vm2037_vm2, %v2394_v6, %v2393_v10  ;;  %v2557_v53 = vsel %vm2037_vm2, %v2556_v8, %v2555_v20  ;;  %v2476_v59 = vsel %vm2037_vm2, %v2475_v7, %v2474_v51  ;;  %v2638_v12 = vsel %vm2037_vm2, %v2637_v48, %v2636_v37  ;;  %2117 = vmatpush.bf16.msrb.mxu3 %v4464_v22 }
 0x300   : > { %v1881_v34 = vpop.f32.mrf.mxu3 }
 0x301   : > { %v1986_v1 = vpack.c.bf16 %v1881_v34, %v1881_v34 }
 0x303   : > { %v2028_v57 = vunpack.c.l.b16 %v1986_v1 }
 0x305   : > { %v2558_v55 = vrot.slane %v2028_v57, 3  ;;  %v2477_v25 = vrot.slane %v2028_v57, 2  ;;  %v2639_v39 = vrot.slane %v2028_v57, 4  ;;  %v2058_v1 = vrot.slane %v2028_v57, 5 }
 0x306   : > { %v2152_v9 = vrot.slane %v2028_v57, 6  ;;  %v2233_v2 = vrot.slane %v2028_v57, 7  ;;  %v2396_v33 = vrot.slane %v2028_v57, 1  ;;  %v2315_v62 = vsel %vm2040_vm3, %v2028_v57, %v2314_v60 }
 0x307   : > { %v2559_v11 = vsel %vm2040_vm3, %v2558_v55, %v2557_v53  ;;  %v2478_v13 = vsel %vm2040_vm3, %v2477_v25, %v2476_v59  ;;  %v2640_v24 = vsel %vm2040_vm3, %v2639_v39, %v2638_v12  ;;  %v2059_v18 = vsel %vm2040_vm3, %v2058_v1, %v4435_v46 }
 0x308   : > { %v1883_v36 = vpop.f32.mrf.mxu3  ;;  %v2153_v8 = vsel %vm2040_vm3, %v2152_v9, %v4439_v44  ;;  %v2234_v10 = vsel %vm2040_vm3, %v2233_v2, %v4443_v43  ;;  %v2397_v50 = vsel %vm2040_vm3, %v2396_v33, %v2395_v47 }
 0x30a   : > { %v1902_v61 = vpop.f32.mrf.mxu1 }
 0x30b   : > { %v1987_v41 = vpack.c.bf16 %v1902_v61, %v1902_v61 }
 0x30d   : > { %v2029_v42 = vunpack.c.l.b16 %v1987_v41 }
 0x30f   : > { %v2560_v63 = vrot.slane %v2029_v42, 2  ;;  %v2479_v21 = vrot.slane %v2029_v42, 1  ;;  %v2641_v58 = vrot.slane %v2029_v42, 3  ;;  %v2060_v32 = vrot.slane %v2029_v42, 4 }
 0x310   : > { %v2154_v36 = vrot.slane %v2029_v42, 5  ;;  %v2316_v60 = vrot.slane %v2029_v42, 7  ;;  %v2398_v47 = vsel %vm2043_vm4, %v2029_v42, %v2397_v50 }
 0x311   : > { %v2561_v52 = vsel %vm2043_vm4, %v2560_v63, %v2559_v11  ;;  %v2480_v56 = vsel %vm2043_vm4, %v2479_v21, %v2478_v13  ;;  %v2642_v29 = vsel %vm2043_vm4, %v2641_v58, %v2640_v24  ;;  %v2235_v11 = vrot.slane %v2029_v42, 6 }
 0x312   : > { %v1904_v3 = vpop.f32.mrf.mxu1  ;;  %v2061_v37 = vsel %vm2043_vm4, %v2060_v32, %v2059_v18  ;;  %v2155_v12 = vsel %vm2043_vm4, %v2154_v36, %v2153_v8  ;;  %v2317_v42 = vsel %vm2043_vm4, %v2316_v60, %v2315_v62  ;;  %v4510_v32 = vld [vmem:[%s4690_s4] sm:$0xff] }
 0x313   : > { %v2236_v24 = vsel %vm2043_vm4, %v2235_v11, %v2234_v10 }
 0x320   : > { %v1923_v14 = vpop.f32.mrf.mxu2 }
 0x321   : > { %v1988_v35 = vpack.c.bf16 %v1923_v14, %v1923_v14 }
 0x323   : > { %v2030_v49 = vunpack.c.l.b16 %v1988_v35 }
 0x325   : > { %v2562_v26 = vrot.slane %v2030_v49, 1  ;;  %v2481_v30 = vsel %vm2046_vm5, %v2030_v49, %v2480_v56  ;;  %v2643_v17 = vrot.slane %v2030_v49, 2  ;;  %v2062_v53 = vrot.slane %v2030_v49, 3 }
 0x326   : > { %v2156_v57 = vrot.slane %v2030_v49, 4  ;;  %v2237_v51 = vrot.slane %v2030_v49, 5  ;;  %v2318_v43 = vrot.slane %v2030_v49, 6  ;;  %v2399_v54 = vrot.slane %v2030_v49, 7 }
 0x327   : > { %v2563_v16 = vsel %vm2046_vm5, %v2562_v26, %v2561_v52  ;;  %v2644_v28 = vsel %vm2046_vm5, %v2643_v17, %v2642_v29  ;;  %v2063_v63 = vsel %vm2046_vm5, %v2062_v53, %v2061_v37 }
 0x328   : > { %v1925_v34 = vpop.f32.mrf.mxu2  ;;  %v2157_v21 = vsel %vm2046_vm5, %v2156_v57, %v2155_v12  ;;  %v2238_v58 = vsel %vm2046_vm5, %v2237_v51, %v2236_v24  ;;  %v2319_v56 = vsel %vm2046_vm5, %v2318_v43, %v2317_v42  ;;  %v2400_v29 = vsel %vm2046_vm5, %v2399_v54, %v2398_v47 }
 0x330   : > { %v1944_v45 = vpop.f32.mrf.mxu3 }
 0x331   : > { %v1989_v15 = vpack.c.bf16 %v1944_v45, %v1944_v45 }
 0x333   : > { %v2031_v6 = vunpack.c.l.b16 %v1989_v15 }
 0x335   : > { %v2564_v7 = vsel %vm2049_vm6, %v2031_v6, %v2563_v16  ;;  %v2482_v20 = vrot.slane %v2031_v6, 7  ;;  %v2645_v55 = vrot.slane %v2031_v6, 1  ;;  %v2064_v59 = vrot.slane %v2031_v6, 2 }
 0x336   : > { %v2158_v48 = vrot.slane %v2031_v6, 3  ;;  %v2239_v61 = vrot.slane %v2031_v6, 4  ;;  %v2320_v13 = vrot.slane %v2031_v6, 5  ;;  %v2401_v39 = vrot.slane %v2031_v6, 6 }
 0x337   : > { %v2483_v25 = vsel %vm2049_vm6, %v2482_v20, %v2481_v30  ;;  %v2646_v44 = vsel %vm2049_vm6, %v2645_v55, %v2644_v28  ;;  %v2065_v52 = vsel %vm2049_vm6, %v2064_v59, %v2063_v63 }
 0x338   : > { %v1946_v46 = vpop.f32.mrf.mxu3  ;;  %v2159_v14 = vsel %vm2049_vm6, %v2158_v48, %v2157_v21  ;;  %v2240_v35 = vsel %vm2049_vm6, %v2239_v61, %v2238_v58  ;;  %v2321_v49 = vsel %vm2049_vm6, %v2320_v13, %v2319_v56  ;;  %v2402_v26 = vsel %vm2049_vm6, %v2401_v39, %v2400_v29 }
 0x33a   : > { %v1965_v23 = vpop.f32.mrf.mxu1 }
 0x33b   : > { %v1990_v41 = vpack.c.bf16 %v1965_v23, %v1965_v23 }
 0x33d   : > { %v2032_v3 = vunpack.c.l.b16 %v1990_v41 }
 0x33f   : > { %v2066_v30 = vrot.slane %v2032_v3, 1  ;;  %v2160_v17 = vrot.slane %v2032_v3, 2  ;;  %v2241_v34 = vrot.slane %v2032_v3, 3  ;;  %v2322_v16 = vrot.slane %v2032_v3, 4 }
 0x340   : > { %v2403_v28 = vrot.slane %v2032_v3, 5  ;;  %v2565_v45 = vrot.slane %v2032_v3, 7  ;;  %v2484_v1 = vrot.slane %v2032_v3, 6  ;;  %v4497_v15 = vsel %vm2052_vm7, %v2032_v3, %v2646_v44 }
 0x341   : > { %v2067_v9 = vsel %vm2052_vm7, %v2066_v30, %v2065_v52  ;;  %v2161_v2 = vsel %vm2052_vm7, %v2160_v17, %v2159_v14  ;;  %v2242_v33 = vsel %vm2052_vm7, %v2241_v34, %v2240_v35  ;;  %v2323_v6 = vsel %vm2052_vm7, %v2322_v16, %v2321_v49 }
 0x342   : > { %v2068_v62 = vpack.c.b16 %v2067_v9, %v4317_v0  ;;  %v2162_v18 = vpack.c.b16 %v2161_v2, %v4330_v19  ;;  %v2243_v8 = vpack.c.b16 %v2242_v33, %v4356_v4  ;;  %v2324_v10 = vpack.c.b16 %v2323_v6, %v4369_v5  ;;  %v1967_v50 = vpop.f32.mrf.mxu1 }
 0x343   : > { %v2404_v20 = vsel %vm2052_vm7, %v2403_v28, %v2402_v26  ;;  %v2566_v55 = vsel %vm2052_vm7, %v2565_v45, %v2564_v7  ;;  %v2485_v53 = vsel %vm2052_vm7, %v2484_v1, %v2483_v25  ;;  %v2648_v0 = vpack.c.b16 %v4497_v15, %v4427_v27 }
 0x344   : > { %2084 = vmatpush.bf16.msrb.mxu2 %v2068_v62  ;;  %2171 = vmatpush.bf16.msrb.mxu1 %v2162_v18  ;;  %v2405_v19 = vpack.c.b16 %v2404_v20, %v4388_v31  ;;  %v2567_v4 = vpack.c.b16 %v2566_v55, %v4407_v38  ;;  %v2486_v5 = vpack.c.b16 %v2485_v53, %v4420_v40  ;;  %v4529_v31 = vld [vmem:[%s4690_s4 + $0x8] sm:$0xff] }
 0x345   : > { %2252 = vmatpush.bf16.msra.mxu3 %v2243_v8 }
 0x347   : > { %3289 = vmatmul.msk.bf16.vlgmr.msrb.gmra.mxu2 %vm2070_vm8, %v4510_v32  ;;  %3297 = vmatmul.msk.bf16.vlgmr.msrb.gmra.mxu1 %vm2070_vm8, %v4510_v32 }
 0x348   : > { %2198 = vmatpush.bf16.msra.mxu2 %v4464_v22  ;;  %2279 = vmatpush.bf16.msra.mxu1 %v4464_v22 }
 0x34c   : > { %2333 = vmatpush.bf16.msrb.mxu2 %v2324_v10  ;;  %2414 = vmatpush.bf16.msrb.mxu1 %v2405_v19 }
 0x357   : > { %3290 = vmatmul.msk.bf16.gmra.mxu2 %vm2070_vm8, %v4529_v31  ;;  %3298 = vmatmul.msk.bf16.gmra.mxu1 %vm2070_vm8, %v4529_v31 }
 0x3c4   : > { %v2173_v38 = vpop.f32.mrf.mxu1 }
 0x3ca   : > { %v2086_v40 = vpop.f32.mrf.mxu2 }
 0x3cc   : > { %v2175_v7 = vpop.f32.mrf.mxu1 }
 0x3cd   : > { %v2183_v36 = vpack.c.bf16 %v2175_v7, %v2173_v38 }
 0x3cf   : > { %3299 = vmatmul.msk.bf16.vlgmr.msra.gmra.mxu2 %vm2070_vm8, %v2183_v36 }
 0x3d0   : > { %2441 = vmatpush.bf16.msra.mxu2 %v4464_v22 }
 0x3d2   : > { %v2088_v11 = vpop.f32.mrf.mxu2 }
 0x3d3   : > { %v2096_v60 = vpack.c.bf16 %v2088_v11, %v2086_v40 }
 0x3d4   : > { %v2178_v57 = vpop.f32.mrf.mxu1 }
 0x3d5   : > { %3295 = vmatmul.msk.bf16.vlgmr.msrb.gmra.mxu3 %vm2070_vm8, %v2096_v60 }
 0x3d6   : > { %2360 = vmatpush.bf16.msrb.mxu3 %v4464_v22 }
 0x3da   : > { %v2091_v51 = vpop.f32.mrf.mxu2 }
 0x3dc   : > { %v2180_v46 = vpop.f32.mrf.mxu1 }
 0x3dd   : > { %v2184_v25 = vpack.c.bf16 %v2180_v46, %v2178_v57 }
 0x3df   : > { %3300 = vmatmul.msk.bf16.gmra.mxu2 %vm2070_vm8, %v2184_v25 }
 0x3e2   : > { %v2093_v44 = vpop.f32.mrf.mxu2 }
 0x3e3   : > { %v2097_v59 = vpack.c.bf16 %v2093_v44, %v2091_v51 }
 0x3e5   : > { %3296 = vmatmul.msk.bf16.gmra.mxu3 %vm2070_vm8, %v2097_v59 }
 0x3ef   : > { %3313 = vmatmul.msk.bf16.vlgmr.msrb.gmra.mxu2 %vm2070_vm8, %v4510_v32 }
 0x3f0   : > { %2576 = vmatpush.bf16.msrb.mxu2 %v2567_v4 }
 0x3f5   : > { %3305 = vmatmul.msk.bf16.vlgmr.msra.gmra.mxu3 %vm2070_vm8, %v4510_v32 }
 0x3f6   : > { %2495 = vmatpush.bf16.msra.mxu3 %v2486_v5 }
 0x3ff   : > { %3314 = vmatmul.msk.bf16.gmra.mxu2 %vm2070_vm8, %v4529_v31 }
 0x405   : > { %3306 = vmatmul.msk.bf16.gmra.mxu3 %vm2070_vm8, %v4529_v31 }
 0x452   : > { %v2200_v43 = vpop.f32.mrf.mxu2 }
 0x453   : > { %3301 = vst.msk [vmem:[%s4552_s9 + $0x20] sm:$0xff] %vm2129_vm9, %v2200_v43 }
 0x458   : > { %v2119_v47 = vpop.f32.mrf.mxu3 }
 0x459   : > { %2130 = vst.msk [vmem:[%s4552_s9] sm:$0xff] %vm2129_vm9, %v2119_v47 }
 0x45a   : > { %v2202_v54 = vpop.f32.mrf.mxu2 }
 0x45b   : > { %3302 = vst.msk [vmem:[%s4552_s9 + $0x28] sm:$0xff] %vm2129_vm9, %v2202_v54 }
 0x460   : > { %v2121_v23 = vpop.f32.mrf.mxu3 }
 0x461   : > { %2131 = vst.msk [vmem:[%s4552_s9 + $0x8] sm:$0xff] %vm2129_vm9, %v2121_v23 }
 0x462   : > { %v2205_v48 = vpop.f32.mrf.mxu2 }
 0x463   : > { %3303 = vst.msk [vmem:[%s4552_s9 + $0x30] sm:$0xff] %vm2129_vm9, %v2205_v48 }
 0x468   : > { %v2124_v61 = vpop.f32.mrf.mxu3 }
 0x469   : > { %2132 = vst.msk [vmem:[%s4552_s9 + $0x10] sm:$0xff] %vm2129_vm9, %v2124_v61 }
 0x46a   : > { %v2207_v13 = vpop.f32.mrf.mxu2 }
 0x46b   : > { %3304 = vst.msk [vmem:[%s4552_s9 + $0x38] sm:$0xff] %vm2129_vm9, %v2207_v13 }
 0x470   : > { %v2126_v39 = vpop.f32.mrf.mxu3 }
 0x471   : > { %2133 = vst.msk [vmem:[%s4552_s9 + $0x18] sm:$0xff] %vm2129_vm9, %v2126_v39 }
 0x472   : > { %v2335_v41 = vpop.f32.mrf.mxu2 }
 0x478   : > { %v2254_v37 = vpop.f32.mrf.mxu3 }
 0x47a   : > { %v2337_v12 = vpop.f32.mrf.mxu2 }
 0x47b   : > { %v2345_v24 = vpack.c.bf16 %v2337_v12, %v2335_v41 }
 0x47d   : > { %3315 = vmatmul.msk.bf16.vlgmr.msrb.gmra.mxu3 %vm2070_vm8, %v2345_v24 }
 0x47e   : > { %2603 = vmatpush.bf16.msrb.mxu3 %v4464_v22 }
 0x480   : > { %v2256_v63 = vpop.f32.mrf.mxu3 }
 0x481   : > { %v2264_v21 = vpack.c.bf16 %v2256_v63, %v2254_v37 }
 0x482   : > { %v2340_v58 = vpop.f32.mrf.mxu2 }
 0x483   : > { %3307 = vmatmul.msk.bf16.vlgmr.msra.gmra.mxu1 %vm2070_vm8, %v2264_v21 }
 0x484   : > { %2522 = vmatpush.bf16.msra.mxu1 %v4464_v22 }
 0x488   : > { %v2259_v42 = vpop.f32.mrf.mxu3 }
 0x48a   : > { %v2342_v3 = vpop.f32.mrf.mxu2 }
 0x48b   : > { %v2346_v52 = vpack.c.bf16 %v2342_v3, %v2340_v58 }
 0x48d   : > { %3316 = vmatmul.msk.bf16.gmra.mxu3 %vm2070_vm8, %v2346_v52 }
 0x490   : > { %v2261_v56 = vpop.f32.mrf.mxu3 }
 0x491   : > { %v2265_v29 = vpack.c.bf16 %v2261_v56, %v2259_v42 }
 0x493   : > { %3308 = vmatmul.msk.bf16.gmra.mxu1 %vm2070_vm8, %v2265_v29 }
 0x49d   : > { %3329 = vmatmul.msk.bf16.vlgmr.msra.gmra.mxu3 %vm2070_vm8, %v4510_v32 }
 0x4a3   : > { %3321 = vmatmul.msk.bf16.vlgmr.msrb.gmra.mxu1 %vm2070_vm8, %v4510_v32 }
 0x4a4   : > { %2657 = vmatpush.bf16.msrb.mxu1 %v2648_v0 }
 0x4ad   : > { %3330 = vmatmul.msk.bf16.gmra.mxu3 %vm2070_vm8, %v4529_v31 }
 0x4b3   : > { %3322 = vmatmul.msk.bf16.gmra.mxu1 %vm2070_vm8, %v4529_v31 }
 0x500   : > { %v2281_v14 = vpop.f32.mrf.mxu1  ;;  %v2362_v35 = vpop.f32.mrf.mxu3 }
 0x501   : > { %3309 = vst.msk [vmem:[%s4552_s9 + $0x40] sm:$0xff] %vm2129_vm9, %v2281_v14 }
 0x502   : > { %3317 = vst.msk [vmem:[%s4552_s9 + $0x60] sm:$0xff] %vm2129_vm9, %v2362_v35 }
 0x508   : > { %v2283_v49 = vpop.f32.mrf.mxu1  ;;  %v2364_v26 = vpop.f32.mrf.mxu3 }
 0x509   : > { %3310 = vst.msk [vmem:[%s4552_s9 + $0x48] sm:$0xff] %vm2129_vm9, %v2283_v49 }
 0x50a   : > { %3318 = vst.msk [vmem:[%s4552_s9 + $0x68] sm:$0xff] %vm2129_vm9, %v2364_v26 }
 0x510   : > { %v2286_v27 = vpop.f32.mrf.mxu1  ;;  %v2367_v30 = vpop.f32.mrf.mxu3 }
 0x511   : > { %3311 = vst.msk [vmem:[%s4552_s9 + $0x50] sm:$0xff] %vm2129_vm9, %v2286_v27 }
 0x512   : > { %3319 = vst.msk [vmem:[%s4552_s9 + $0x70] sm:$0xff] %vm2129_vm9, %v2367_v30 }
 0x518   : > { %v2288_v17 = vpop.f32.mrf.mxu1  ;;  %v2369_v34 = vpop.f32.mrf.mxu3 }
 0x519   : > { %3312 = vst.msk [vmem:[%s4552_s9 + $0x58] sm:$0xff] %vm2129_vm9, %v2288_v17 }
 0x51a   : > { %3320 = vst.msk [vmem:[%s4552_s9 + $0x78] sm:$0xff] %vm2129_vm9, %v2369_v34 }
 0x520   : > { %v2416_v16 = vpop.f32.mrf.mxu1  ;;  %v2497_v28 = vpop.f32.mrf.mxu3 }
 0x528   : > { %v2418_v45 = vpop.f32.mrf.mxu1  ;;  %v2499_v1 = vpop.f32.mrf.mxu3 }
 0x529   : > { %v2426_v15 = vpack.c.bf16 %v2418_v45, %v2416_v16  ;;  %v2507_v9 = vpack.c.bf16 %v2499_v1, %v2497_v28 }
 0x52b   : > { %3323 = vmatmul.msk.bf16.vlgmr.msra.gmra.mxu2 %vm2070_vm8, %v2426_v15  ;;  %3331 = vmatmul.msk.bf16.vlgmr.msra.gmra.mxu1 %vm2070_vm8, %v2507_v9 }
 0x52c   : > { %2684 = vmatpush.bf16.msra.mxu2 %v4464_v22 }
 0x530   : > { %v2421_v2 = vpop.f32.mrf.mxu1  ;;  %v2502_v33 = vpop.f32.mrf.mxu3 }
 0x538   : > { %v2423_v6 = vpop.f32.mrf.mxu1  ;;  %v2504_v62 = vpop.f32.mrf.mxu3 }
 0x539   : > { %v2427_v18 = vpack.c.bf16 %v2423_v6, %v2421_v2  ;;  %v2508_v8 = vpack.c.bf16 %v2504_v62, %v2502_v33 }
 0x53b   : > { %3324 = vmatmul.msk.bf16.gmra.mxu2 %vm2070_vm8, %v2427_v18  ;;  %3332 = vmatmul.msk.bf16.gmra.mxu1 %vm2070_vm8, %v2508_v8 }
 0x54b   : > { %3337 = vmatmul.msk.bf16.vlgmr.msrb.gmra.mxu2 %vm2070_vm8, %v4510_v32  ;;  %3345 = vmatmul.msk.bf16.vlgmr.msrb.gmra.mxu1 %vm2070_vm8, %v4510_v32 }
 0x55b   : > { %3338 = vmatmul.msk.bf16.gmra.mxu2 %vm2070_vm8, %v4529_v31  ;;  %3346 = vmatmul.msk.bf16.gmra.mxu1 %vm2070_vm8, %v4529_v31 }
 0x5a8   : > { %v2524_v22 = vpop.f32.mrf.mxu1 }
 0x5a9   : > { %3333 = vst.msk [vmem:[%s4552_s9 + $0xa0] sm:$0xff] %vm2129_vm9, %v2524_v22 }
 0x5ae   : > { %v2443_v10 = vpop.f32.mrf.mxu2 }
 0x5af   : > { %3325 = vst.msk [vmem:[%s4552_s9 + $0x80] sm:$0xff] %vm2129_vm9, %v2443_v10 }
 0x5b0   : > { %v2526_v50 = vpop.f32.mrf.mxu1 }
 0x5b1   : > { %3334 = vst.msk [vmem:[%s4552_s9 + $0xa8] sm:$0xff] %vm2129_vm9, %v2526_v50 }
 0x5b6   : > { %v2445_v20 = vpop.f32.mrf.mxu2 }
 0x5b7   : > { %3326 = vst.msk [vmem:[%s4552_s9 + $0x88] sm:$0xff] %vm2129_vm9, %v2445_v20 }
 0x5b8   : > { %v2529_v32 = vpop.f32.mrf.mxu1 }
 0x5b9   : > { %3335 = vst.msk [vmem:[%s4552_s9 + $0xb0] sm:$0xff] %vm2129_vm9, %v2529_v32 }
 0x5be   : > { %v2448_v55 = vpop.f32.mrf.mxu2 }
 0x5bf   : > { %3327 = vst.msk [vmem:[%s4552_s9 + $0x90] sm:$0xff] %vm2129_vm9, %v2448_v55 }
 0x5c0   : > { %v2531_v53 = vpop.f32.mrf.mxu1 }
 0x5c1   : > { %3336 = vst.msk [vmem:[%s4552_s9 + $0xb8] sm:$0xff] %vm2129_vm9, %v2531_v53 }
 0x5c6   : > { %v2450_v0 = vpop.f32.mrf.mxu2 }
 0x5c7   : > { %3328 = vst.msk [vmem:[%s4552_s9 + $0x98] sm:$0xff] %vm2129_vm9, %v2450_v0 }
 0x5c8   : > { %v2659_v19 = vpop.f32.mrf.mxu1 }
 0x5ce   : > { %v2578_v4 = vpop.f32.mrf.mxu2 }
 0x5d0   : > { %v2661_v5 = vpop.f32.mrf.mxu1 }
 0x5d1   : > { %v2669_v31 = vpack.c.bf16 %v2661_v5, %v2659_v19 }
 0x5d3   : > { %3347 = vmatmul.msk.bf16.vlgmr.msra.gmra.mxu2 %vm2070_vm8, %v2669_v31 }
 0x5d6   : > { %v2580_v38 = vpop.f32.mrf.mxu2 }
 0x5d7   : > { %v2588_v40 = vpack.c.bf16 %v2580_v38, %v2578_v4 }
 0x5d8   : > { %v2664_v7 = vpop.f32.mrf.mxu1 }
 0x5d9   : > { %3339 = vmatmul.msk.bf16.vlgmr.msrb.gmra.mxu3 %vm2070_vm8, %v2588_v40 }
 0x5de   : > { %v2583_v36 = vpop.f32.mrf.mxu2 }
 0x5e0   : > { %v2666_v11 = vpop.f32.mrf.mxu1 }
 0x5e1   : > { %v2670_v60 = vpack.c.bf16 %v2666_v11, %v2664_v7 }
 0x5e3   : > { %3348 = vmatmul.msk.bf16.gmra.mxu2 %vm2070_vm8, %v2670_v60 }
 0x5e6   : > { %v2585_v57 = vpop.f32.mrf.mxu2 }
 0x5e7   : > { %v2589_v51 = vpack.c.bf16 %v2585_v57, %v2583_v36 }
 0x5e9   : > { %3340 = vmatmul.msk.bf16.gmra.mxu3 %vm2070_vm8, %v2589_v51 }
 0x656   : > { %v2686_v46 = vpop.f32.mrf.mxu2 }
 0x657   : > { %3349 = vst.msk [vmem:[%s4552_s9 + $0xe0] sm:$0xff] %vm2129_vm9, %v2686_v46 }
 0x65c   : > { %v2605_v25 = vpop.f32.mrf.mxu3 }
 0x65d   : > { %3341 = vst.msk [vmem:[%s4552_s9 + $0xc0] sm:$0xff] %vm2129_vm9, %v2605_v25 }
 0x65e   : > { %v2688_v44 = vpop.f32.mrf.mxu2 }
 0x65f   : > { %3350 = vst.msk [vmem:[%s4552_s9 + $0xe8] sm:$0xff] %vm2129_vm9, %v2688_v44 }
 0x664   : > { %v2607_v59 = vpop.f32.mrf.mxu3 }
 0x665   : > { %3342 = vst.msk [vmem:[%s4552_s9 + $0xc8] sm:$0xff] %vm2129_vm9, %v2607_v59 }
 0x666   : > { %v2691_v43 = vpop.f32.mrf.mxu2 }
 0x667   : > { %3351 = vst.msk [vmem:[%s4552_s9 + $0xf0] sm:$0xff] %vm2129_vm9, %v2691_v43 }
 0x66c   : > { %v2610_v47 = vpop.f32.mrf.mxu3 }
 0x66d   : > { %3343 = vst.msk [vmem:[%s4552_s9 + $0xd0] sm:$0xff] %vm2129_vm9, %v2610_v47 }
 0x66e   : > { %v2693_v54 = vpop.f32.mrf.mxu2 }
 0x66f   : > { %3352 = vst.msk [vmem:[%s4552_s9 + $0xf8] sm:$0xff] %vm2129_vm9, %v2693_v54 }
 0x674   : > { %v2612_v23 = vpop.f32.mrf.mxu3 }
 0x675   : > { %3344 = vst.msk [vmem:[%s4552_s9 + $0xd8] sm:$0xff] %vm2129_vm9, %v2612_v23 }
 0x676   : > { %3549 = shalt.err (!%p3546_p3)
}
 0x677   : > { %s3586_s10 = smov 128   ;;  %s3587_s9 = smov 8  }
 0x678   : > { %3479 = dma.vmem_to_hbm [thread:$0]  (%p3661_p5), %s2715_s20, 4096, %s2717_s17, %s2702_s25, %s3586_s10, %s3586_s10, %s3587_s9  }
 0x679 PF: > { %p3485_p4 = scmp.ge.s32.totalorder %s3584_s24, 2  ;;  %s2731_s12 = sand.u32 1, %s3572_s21  }
 0x67a   : > { %s2732_s13 = scalar_lea.sflag [#allocation3], %s2731_s12 }
 0x67b   : > { %p3482_p7 = pnand %p3485_p4, %p3665_p6 }
 0x67d   : > { %p3483_p8 = pneg %p3482_p7 }
 0x67f   : > { %3567 = dma.done.wait (%p3483_p8), %s2732_s13, 4096  }
 0x680   : > { %3569 = vsyncadd (%p3483_p8), %s2732_s13, 4294963200  ;;  %p16_p9 = scmp.ge.s32.totalorder %s3648_s27, 4   ;;  %s4695_s21 = smov %s3576_s22 }
 0x681   : > { %s4696_s22 = smov %s3580_s23  ;;  %s4697_s23 = smov %s3659_s30 }
 0x682   : > { %s4698_s24 = smov %s3648_s27  ;;  %18 = sbr.rel (!%p16_p9) target bundleno = 3 (0x3), region = 86 }
 0x687   :  { %2738 = vsyncpa [#allocation3], 1 }
 0x688   :  { %2740 = vsyncpa [#allocation3 + $0x1], 1 }

</bundles_post_ra>
